<compile_context>
chip_gen: v5e
topology: v5e:2x2
jax: 0.10.0
libtpu: 0.0.40
codegen_flags: <defaults>
</compile_context>

<pallas_src>
import functools

import jax
import jax.numpy as jnp
from jax import lax
from jax.experimental import pallas as pl
from jax.experimental.pallas import tpu as pltpu


def _round_up(x, m):
    return (x + m - 1) // m * m


@functools.lru_cache(maxsize=None)
def _tpu_generation():
    """Best-effort TPU generation from device_kind; 0 if unknown."""
    try:
        kind = jax.devices()[0].device_kind.lower()
    except Exception:
        return 0
    for g in (7, 6, 5, 4):
        if ("v%d" % g) in kind or ("tpu%d" % g) in kind:
            return g
    return 0


@functools.lru_cache(maxsize=None)
def _vmem_limit_bytes():
    """Generation-aware scoped-VMEM limit with headroom for pipeline buffers."""
    try:
        cap = int(pltpu.get_tpu_info().vmem_capacity_bytes)
    except Exception:
        cap = 64 << 20
    limit = max(32 << 20, min(cap - (16 << 20), 112 << 20))
    if _tpu_generation() >= 7:          # 64 MiB physical per TC on v7x
        limit = min(limit, 48 << 20)
    return int(limit)


def _pick_tb(T, Nb, I, H_pad, vmem_limit, max_tb=64):
    """Largest time-chunk that fits the VMEM budget (no divisibility req.)."""
    G = 3 * H_pad
    per_t = Nb * (2 * 2 * I          # x block   (bf16, double-buffered)
                  + 2 * 2 * H_pad    # out block (bf16, double-buffered)
                  + 2 * 4            # mask block (f32, double-buffered)
                  + 4 * G)           # gi scratch (f32, single)
    fixed = 2 * (I * G + H_pad * G) + 4 * Nb * H_pad + (4 << 20)
    budget = vmem_limit - fixed
    tb = budget // per_t if budget > per_t else 1
    return int(max(1, min(tb, max_tb, T)))


def _gru_chunk_kernel(x_ref, m_ref, h0_ref, wih_ref, whh_ref,
                      out_ref, hxs_ref, gi_ref, h_ref,
                      *, T, bf16_gates):
    """One grid step == one (Tb timesteps, Nb batch rows) chunk of the GRU."""
    t_idx = pl.program_id(1)
    Tb, Nb, I = x_ref.shape
    H = h_ref.shape[-1]                       # padded hidden (multiple of 128)

    @pl.when(t_idx == 0)
    def _():
        h_ref[...] = h0_ref[...]

    # Hoisted input projection: one fat MXU matmul for the whole time chunk,
    # staged in VMEM scratch so the unrolled loop re-loads one (Nb, 3H) slice
    # per step instead of keeping the whole chunk live in vregs.
    x_chunk = x_ref[...].reshape(Tb * Nb, I)
    gi_ref[...] = jnp.dot(
        x_chunk, wih_ref[...],
        preferred_element_type=jnp.float32).reshape(Tb, Nb, 3 * H)

    whh = whh_ref[...]                        # (H_pad, 3H_pad) bf16
    masks = m_ref[...]                        # (Tb, Nb, 1) f32
    h = h_ref[...]                            # (Nb, H_pad) f32

    def nonlin(fn, v):
        if bf16_gates:                        # bf16 EUP path on v6e / v7x
            return fn(v.astype(jnp.bfloat16)).astype(jnp.float32)
        return fn(v)                          # f32 path (v5e and unknown)

    ragged = (T % Tb) != 0
    for s in range(Tb):
        h_in = h * masks[s]                   # episode reset (0/1 masks)
        gh = jnp.dot(h_in.astype(whh.dtype), whh,
                     preferred_element_type=jnp.float32)      # (Nb, 3H) f32
        gi = gi_ref[s]                                        # (Nb, 3H) f32
        r = nonlin(jax.nn.sigmoid, gi[:, 0:H] + gh[:, 0:H])
        z = nonlin(jax.nn.sigmoid, gi[:, H:2 * H] + gh[:, H:2 * H])
        n = nonlin(jnp.tanh, gi[:, 2 * H:3 * H] + r * gh[:, 2 * H:3 * H])
        h_new = (1.0 - z) * n + z * h_in
        out_ref[s] = h_new.astype(out_ref.dtype)              # bf16 writeback
        if ragged:
            # Steps past the true sequence length must not advance the carry.
            h = jnp.where(t_idx * Tb + s < T, h_new, h)
        else:
            h = h_new

    h_ref[...] = h

    @pl.when(t_idx == pl.num_programs(1) - 1)
    def _():
        hxs_ref[...] = h


@functools.partial(jax.jit, static_argnames=("input_size", "hidden_size"))
def _gru_forward(x, hxs, masks, w_ih_t_p, w_hh_t_p, *, input_size, hidden_size):
    N = hxs.shape[0]
    T = x.shape[0] // N
    I, H = input_size, hidden_size
    H_pad = w_hh_t_p.shape[0]
    G = w_hh_t_p.shape[1]                      # 3 * H_pad

    gen = _tpu_generation()
    vmem_limit = _vmem_limit_bytes()
    bf16_gates = gen >= 6                      # v5e EUP has no bf16 path

    N_pad = _round_up(N, 16)                   # bf16 sublane packing
    # Split the batch across TensorCores only on v7x and only when each tile
    # still holds >= 256 rows (keeps MXU matmuls full-width on both cores).
    n_btiles = 2 if (gen >= 7 and N_pad >= 512) else 1
    Nb = N_pad // n_btiles

    Tb = _pick_tb(T, Nb, I, H_pad, vmem_limit)
    T_pad = _round_up(T, Tb)
    n_ttiles = T_pad // Tb

    # Lightweight padding (jnp.pad, no I padding).  Padded batch rows start at
    # zero and are sliced off; padded time steps are guarded in-kernel.
    x_tnf = x.reshape(T, N, I).astype(jnp.bfloat16)
    m_tn1 = masks.reshape(T, N, 1).astype(jnp.float32)
    x_p = jnp.pad(x_tnf, ((0, T_pad - T), (0, N_pad - N), (0, 0)))
    m_p = jnp.pad(m_tn1, ((0, T_pad - T), (0, N_pad - N), (0, 0)))
    h0_p = jnp.pad(hxs.astype(jnp.float32), ((0, N_pad - N), (0, H_pad - H)))

    kernel = functools.partial(_gru_chunk_kernel, T=T, bf16_gates=bf16_gates)

    grid_spec = pltpu.PrefetchScalarGridSpec(
        num_scalar_prefetch=0,
        grid=(n_btiles, n_ttiles),
        in_specs=[
            pl.BlockSpec((Tb, Nb, I), lambda b, t: (t, b, 0)),     # x chunk
            # Mask kept as a (Tb, Nb, 1) stream: tiny DMA, but the (Nb, 1)
            # layout makes the per-step lane-broadcast against h free.
            pl.BlockSpec((Tb, Nb, 1), lambda b, t: (t, b, 0)),     # mask chunk
            pl.BlockSpec((Nb, H_pad), lambda b, t: (b, 0)),        # h0
            # Grid-invariant weights: single-buffered (no VMEM duplication).
            pl.BlockSpec((I, G), lambda b, t: (0, 0),
                         pipeline_mode=pl.Buffered(1)),            # W_ih^T
            pl.BlockSpec((H_pad, G), lambda b, t: (0, 0),
                         pipeline_mode=pl.Buffered(1)),            # W_hh^T
        ],
        out_specs=[
            pl.BlockSpec((Tb, Nb, H_pad), lambda b, t: (t, b, 0)),  # per-step h (bf16)
            pl.BlockSpec((Nb, H_pad), lambda b, t: (b, 0)),         # final h (f32)
        ],
        scratch_shapes=[
            pltpu.VMEM((Tb, Nb, G), jnp.float32),   # staged input projection
            pltpu.VMEM((Nb, H_pad), jnp.float32),   # carried hidden state
        ],
    )

    out_p, hxs_p = pl.pallas_call(
        kernel,
        out_shape=(
            jax.ShapeDtypeStruct((T_pad, N_pad, H_pad), jnp.bfloat16),
            jax.ShapeDtypeStruct((N_pad, H_pad), jnp.float32),
        ),
        grid_spec=grid_spec,
        input_output_aliases={2: 1},   # reuse the h0 buffer for the final hidden
        compiler_params=pltpu.CompilerParams(
            dimension_semantics=("parallel", "arbitrary"),
            vmem_limit_bytes=vmem_limit),
    )(x_p, m_p, h0_p, w_ih_t_p, w_hh_t_p)

    out = out_p[:T, :N, :H].astype(jnp.float32).reshape(T * N, H)
    return out, hxs_p[:N, :H]


class RNNPallas:
    """GRU-core RNN matching the PyTorch module's forward semantics."""

    def __init__(self, input_size, hidden_size, key):
        self.input_size = input_size
        self.hidden_size = hidden_size
        H, I = hidden_size, input_size
        H_pad = _round_up(H, 128)

        k1, k2 = jax.random.split(key)
        ortho = jax.nn.initializers.orthogonal()
        # PyTorch GRU params: weight_ih_l0 (3H, I), weight_hh_l0 (3H, H);
        # biases are initialized to 0 by the module (compiled out here).
        w_ih = ortho(k1, (3 * H, I), jnp.float32)
        w_hh = ortho(k2, (3 * H, H), jnp.float32)
        self.w_ih = w_ih            # kept f32 for the pure-JAX reference
        self.w_hh = w_hh

        # Transposed, gate-aligned layout: gate g occupies columns
        # [g*H_pad, g*H_pad + H) so every gate slice starts on a 128-lane
        # boundary.  Weights stored in bf16 (MXU inputs).
        def pad_gates(w_t, rows_pad):              # w_t: (rows, 3H)
            rows = w_t.shape[0]
            w_t = jnp.pad(w_t, ((0, rows_pad - rows), (0, 0)))
            out = jnp.zeros((rows_pad, 3 * H_pad), jnp.float32)
            for g in range(3):
                out = out.at[:, g * H_pad:g * H_pad + H].set(
                    w_t[:, g * H:(g + 1) * H])
            return out

        # W_ih^T keeps its true row count I (contraction dim matches un-padded x).
        self.w_ih_t_p = pad_gates(w_ih.T, I).astype(jnp.bfloat16)
        self.w_hh_t_p = pad_gates(w_hh.T, H_pad).astype(jnp.bfloat16)

    def __call__(self, x, hxs, masks):
        # x: (T*N, input_size) or (N, input_size); hxs: (N, H); masks: matching rows.
        return _gru_forward(x, hxs, masks, self.w_ih_t_p, self.w_hh_t_p,
                            input_size=self.input_size,
                            hidden_size=self.hidden_size)


def _reference(x, hxs, masks, w_ih, w_hh, input_size, hidden_size, bf16_gates):
    """Pure-JAX reference (lax.scan) mirroring the kernel's precision policy."""
    N = hxs.shape[0]
    T = x.shape[0] // N
    H = hidden_size
    x_tnf = x.reshape(T, N, input_size)
    m_tn1 = masks.reshape(T, N, 1).astype(jnp.float32)
    w_ih_t = w_ih.T.astype(jnp.bfloat16)
    w_hh_t = w_hh.T.astype(jnp.bfloat16)

    def nl(fn, v):
        if bf16_gates:
            return fn(v.astype(jnp.bfloat16)).astype(jnp.float32)
        return fn(v)

    def step(h, inp):
        xt, mt = inp
        h = h * mt
        gi = jnp.dot(xt.astype(jnp.bfloat16), w_ih_t, preferred_element_type=jnp.float32)
        gh = jnp.dot(h.astype(jnp.bfloat16), w_hh_t, preferred_element_type=jnp.float32)
        r = nl(jax.nn.sigmoid, gi[:, :H] + gh[:, :H])
        z = nl(jax.nn.sigmoid, gi[:, H:2 * H] + gh[:, H:2 * H])
        n = nl(jnp.tanh, gi[:, 2 * H:] + r * gh[:, 2 * H:])
        h_new = (1.0 - z) * n + z * h
        return h_new, h_new

    h_final, outs = lax.scan(step, hxs.astype(jnp.float32), (x_tnf, m_tn1))
    return outs.reshape(T * N, H), h_final


if __name__ == "__main__":
    input_size, hidden_size = 16, 32
    T, N = 8, 4

    key = jax.random.PRNGKey(0)
    k_param, k_x, k_h, k_m = jax.random.split(key, 4)

    rnn = RNNPallas(input_size, hidden_size, k_param)
    bf16_gates = _tpu_generation() >= 6       # mirror the kernel's gate precision

    # multi-step branch: x has T*N rows, hxs has N rows, binary masks with zeros
    x = jax.random.normal(k_x, (T * N, input_size), jnp.float32)
    hxs = jax.random.normal(k_h, (N, hidden_size), jnp.float32)
    masks = (jax.random.uniform(k_m, (T * N, 1)) > 0.2).astype(jnp.float32)

    out, hxs_new = rnn(x, hxs, masks)
    out, hxs_new = jax.block_until_ready((out, hxs_new))

    ref_out, ref_h = _reference(x, hxs, masks, rnn.w_ih, rnn.w_hh,
                                input_size, hidden_size, bf16_gates)
    ref_out_bf16 = ref_out.astype(jnp.bfloat16).astype(jnp.float32)
    assert out.shape == (T * N, hidden_size) and hxs_new.shape == (N, hidden_size)
    assert jnp.allclose(out, ref_out_bf16, atol=2e-2, rtol=2e-2), "output mismatch vs reference"
    assert jnp.allclose(hxs_new, ref_h, atol=2e-2, rtol=2e-2), "hidden mismatch vs reference"

    # single-step branch (x.size(0) == hxs.size(0)): same kernel with T == 1
    out1, hxs1 = rnn(x[:N], hxs, masks[:N])
    out1, hxs1 = jax.block_until_ready((out1, hxs1))
    ref_o1, ref_h1 = _reference(x[:N], hxs, masks[:N], rnn.w_ih, rnn.w_hh,
                                input_size, hidden_size, bf16_gates)
    ref_o1_bf16 = ref_o1.astype(jnp.bfloat16).astype(jnp.float32)
    assert out1.shape == (N, hidden_size) and hxs1.shape == (N, hidden_size)
    assert jnp.allclose(out1, ref_o1_bf16, atol=2e-2, rtol=2e-2), "single-step output mismatch"
    assert jnp.allclose(hxs1, ref_h1, atol=2e-2, rtol=2e-2), "single-step hidden mismatch"

    print("KERNEL_OK")
</pallas_src>

<mosaic_0001>
module attributes {stable_mosaic.version = 11 : i64} {
  func.func @_gru_chunk_kernel(%arg0: i32, %arg1: i32, %arg2: memref<8x16x16xbf16, #tpu.memory_space<vmem>>, %arg3: memref<8x16x1xf32, #tpu.memory_space<vmem>>, %arg4: memref<16x128xf32, #tpu.memory_space<vmem>>, %arg5: memref<16x384xbf16, #tpu.memory_space<vmem>>, %arg6: memref<128x384xbf16, #tpu.memory_space<vmem>>, %arg7: memref<8x16x128xbf16, #tpu.memory_space<vmem>>, %arg8: memref<16x128xf32, #tpu.memory_space<vmem>>, %arg9: memref<8x16x384xf32, #tpu.memory_space<vmem>>, %arg10: memref<16x128xf32, #tpu.memory_space<vmem>>) attributes {dimension_semantics = [#tpu.dimension_semantics<parallel>, #tpu.dimension_semantics<arbitrary>], iteration_bounds = array<i64: 1, 1>, scalar_prefetch = 0 : i64, scratch_operands = 2 : i64, tpu.core_type = #tpu.core_type<tc>, window_params = [{transform_indices = @transform_0, window_bounds = array<i64: 8, 16, 16>}, {transform_indices = @transform_1, window_bounds = array<i64: 8, 16, 1>}, {transform_indices = @transform_2, window_bounds = array<i64: 16, 128>}, {pipeline_mode = #tpu.pipeline_mode<synchronous>, transform_indices = @transform_3, window_bounds = array<i64: 16, 384>}, {pipeline_mode = #tpu.pipeline_mode<synchronous>, transform_indices = @transform_4, window_bounds = array<i64: 128, 384>}, {transform_indices = @transform_5, window_bounds = array<i64: 8, 16, 128>}, {transform_indices = @transform_6, window_bounds = array<i64: 16, 128>}]} {
    %c0_i32 = arith.constant 0 : i32
    %0 = arith.cmpi eq, %arg1, %c0_i32 : i32
    %1 = arith.extui %0 : i1 to i32
    %c0_i32_0 = arith.constant 0 : i32
    %2 = arith.cmpi ne, %1, %c0_i32_0 : i32
    scf.if %2 {
      %c0_92 = arith.constant 0 : index
      %c0_93 = arith.constant 0 : index
      %320 = vector.load %arg4[%c0_92, %c0_93] : memref<16x128xf32, #tpu.memory_space<vmem>>, vector<16x128xf32>
      %c0_94 = arith.constant 0 : index
      %c0_95 = arith.constant 0 : index
      %321 = vector.load %arg10[%c0_94, %c0_95] : memref<16x128xf32, #tpu.memory_space<vmem>>, vector<16x128xf32>
      tpu.vector_store %arg10[%c0_94, %c0_95], %320 {strides = array<i32>} : memref<16x128xf32, #tpu.memory_space<vmem>>, vector<16x128xf32>,
    } else {
    }
    %c0 = arith.constant 0 : index
    %c0_1 = arith.constant 0 : index
    %c0_2 = arith.constant 0 : index
    %3 = vector.load %arg2[%c0, %c0_1, %c0_2] : memref<8x16x16xbf16, #tpu.memory_space<vmem>>, vector<8x16x16xbf16>
    %4 = vector.shape_cast %3 : vector<8x16x16xbf16> to vector<128x16xbf16>
    %c0_3 = arith.constant 0 : index
    %c0_4 = arith.constant 0 : index
    %5 = vector.load %arg5[%c0_3, %c0_4] : memref<16x384xbf16, #tpu.memory_space<vmem>>, vector<16x384xbf16>
    %cst = arith.constant dense<0.000000e+00> : vector<128x384xf32>
    %6 = tpu.matmul %4, %5, %cst {dimension_numbers = #tpu.dot_dimension_numbers<[1], [0], [0], [1], [0, 0, 1, 1], [], []>} : vector<128x16xbf16>, vector<16x384xbf16>, vector<128x384xf32> -> vector<128x384xf32>
    %7 = vector.shape_cast %6 : vector<128x384xf32> to vector<8x16x384xf32>
    %c0_5 = arith.constant 0 : index
    %c0_6 = arith.constant 0 : index
    %c0_7 = arith.constant 0 : index
    %8 = vector.load %arg9[%c0_5, %c0_6, %c0_7] : memref<8x16x384xf32, #tpu.memory_space<vmem>>, vector<8x16x384xf32>
    tpu.vector_store %arg9[%c0_5, %c0_6, %c0_7], %7 {strides = array<i32>} : memref<8x16x384xf32, #tpu.memory_space<vmem>>, vector<8x16x384xf32>,
    %c0_8 = arith.constant 0 : index
    %c0_9 = arith.constant 0 : index
    %9 = vector.load %arg6[%c0_8, %c0_9] : memref<128x384xbf16, #tpu.memory_space<vmem>>, vector<128x384xbf16>
    %c0_10 = arith.constant 0 : index
    %c0_11 = arith.constant 0 : index
    %c0_12 = arith.constant 0 : index
    %10 = vector.load %arg3[%c0_10, %c0_11, %c0_12] : memref<8x16x1xf32, #tpu.memory_space<vmem>>, vector<8x16x1xf32>
    %c0_13 = arith.constant 0 : index
    %c0_14 = arith.constant 0 : index
    %11 = vector.load %arg10[%c0_13, %c0_14] : memref<16x128xf32, #tpu.memory_space<vmem>>, vector<16x128xf32>
    %12 = vector.extract_strided_slice %10 {offsets = [0, 0, 0], sizes = [1, 16, 1], strides = [1, 1, 1]} : vector<8x16x1xf32> to vector<1x16x1xf32>
    %13 = vector.shape_cast %12 : vector<1x16x1xf32> to vector<16x1xf32>
    %14 = vector.broadcast %13 : vector<16x1xf32> to vector<16x128xf32>
    %15 = arith.mulf %11, %14 : vector<16x128xf32>
    %16 = arith.truncf %15 : vector<16x128xf32> to vector<16x128xbf16>
    %cst_15 = arith.constant dense<0.000000e+00> : vector<16x384xf32>
    %17 = tpu.matmul %16, %9, %cst_15 {dimension_numbers = #tpu.dot_dimension_numbers<[1], [0], [0], [1], [0, 0, 1, 1], [], []>} : vector<16x128xbf16>, vector<128x384xbf16>, vector<16x384xf32> -> vector<16x384xf32>
    %c0_16 = arith.constant 0 : index
    %c0_17 = arith.constant 0 : index
    %c0_18 = arith.constant 0 : index
    %18 = vector.load %arg9[%c0_16, %c0_17, %c0_18] : memref<8x16x384xf32, #tpu.memory_space<vmem>>, vector<1x16x384xf32>
    %19 = vector.shape_cast %18 : vector<1x16x384xf32> to vector<16x384xf32>
    %20 = vector.extract_strided_slice %19 {offsets = [0, 0], sizes = [16, 128], strides = [1, 1]} : vector<16x384xf32> to vector<16x128xf32>
    %21 = vector.extract_strided_slice %17 {offsets = [0, 0], sizes = [16, 128], strides = [1, 1]} : vector<16x384xf32> to vector<16x128xf32>
    %22 = arith.addf %20, %21 : vector<16x128xf32>
    %23 = arith.negf %22 : vector<16x128xf32>
    %24 = math.exp %23 : vector<16x128xf32>
    %cst_19 = arith.constant 1.000000e+00 : f32
    %25 = vector.broadcast %cst_19 : f32 to vector<16x128xf32>
    %26 = arith.addf %25, %24 : vector<16x128xf32>
    %27 = arith.divf %25, %26 : vector<16x128xf32>
    %28 = vector.extract_strided_slice %19 {offsets = [0, 128], sizes = [16, 128], strides = [1, 1]} : vector<16x384xf32> to vector<16x128xf32>
    %29 = vector.extract_strided_slice %17 {offsets = [0, 128], sizes = [16, 128], strides = [1, 1]} : vector<16x384xf32> to vector<16x128xf32>
    %30 = arith.addf %28, %29 : vector<16x128xf32>
    %31 = arith.negf %30 : vector<16x128xf32>
    %32 = math.exp %31 : vector<16x128xf32>
    %cst_20 = arith.constant 1.000000e+00 : f32
    %33 = vector.broadcast %cst_20 : f32 to vector<16x128xf32>
    %34 = arith.addf %33, %32 : vector<16x128xf32>
    %35 = arith.divf %33, %34 : vector<16x128xf32>
    %36 = vector.extract_strided_slice %19 {offsets = [0, 256], sizes = [16, 128], strides = [1, 1]} : vector<16x384xf32> to vector<16x128xf32>
    %37 = vector.extract_strided_slice %17 {offsets = [0, 256], sizes = [16, 128], strides = [1, 1]} : vector<16x384xf32> to vector<16x128xf32>
    %38 = arith.mulf %27, %37 : vector<16x128xf32>
    %39 = arith.addf %36, %38 : vector<16x128xf32>
    %40 = math.tanh %39 : vector<16x128xf32>
    %cst_21 = arith.constant 1.000000e+00 : f32
    %41 = vector.broadcast %cst_21 : f32 to vector<16x128xf32>
    %42 = arith.subf %41, %35 : vector<16x128xf32>
    %43 = arith.mulf %42, %40 : vector<16x128xf32>
    %44 = arith.mulf %35, %15 : vector<16x128xf32>
    %45 = arith.addf %43, %44 : vector<16x128xf32>
    %46 = arith.truncf %45 : vector<16x128xf32> to vector<16x128xbf16>
    %c0_22 = arith.constant 0 : index
    %c0_23 = arith.constant 0 : index
    %c0_24 = arith.constant 0 : index
    %47 = vector.load %arg7[%c0_22, %c0_23, %c0_24] : memref<8x16x128xbf16, #tpu.memory_space<vmem>>, vector<1x16x128xbf16>
    %48 = vector.shape_cast %47 : vector<1x16x128xbf16> to vector<16x128xbf16>
    %49 = vector.shape_cast %46 : vector<16x128xbf16> to vector<1x16x128xbf16>
    tpu.vector_store %arg7[%c0_22, %c0_23, %c0_24], %49 {strides = array<i32>} : memref<8x16x128xbf16, #tpu.memory_space<vmem>>, vector<1x16x128xbf16>,
    %50 = vector.extract_strided_slice %10 {offsets = [1, 0, 0], sizes = [1, 16, 1], strides = [1, 1, 1]} : vector<8x16x1xf32> to vector<1x16x1xf32>
    %51 = vector.shape_cast %50 : vector<1x16x1xf32> to vector<16x1xf32>
    %52 = vector.broadcast %51 : vector<16x1xf32> to vector<16x128xf32>
    %53 = arith.mulf %45, %52 : vector<16x128xf32>
    %54 = arith.truncf %53 : vector<16x128xf32> to vector<16x128xbf16>
    %cst_25 = arith.constant dense<0.000000e+00> : vector<16x384xf32>
    %55 = tpu.matmul %54, %9, %cst_25 {dimension_numbers = #tpu.dot_dimension_numbers<[1], [0], [0], [1], [0, 0, 1, 1], [], []>} : vector<16x128xbf16>, vector<128x384xbf16>, vector<16x384xf32> -> vector<16x384xf32>
    %c1 = arith.constant 1 : index
    %c0_26 = arith.constant 0 : index
    %c0_27 = arith.constant 0 : index
    %56 = vector.load %arg9[%c1, %c0_26, %c0_27] : memref<8x16x384xf32, #tpu.memory_space<vmem>>, vector<1x16x384xf32>
    %57 = vector.shape_cast %56 : vector<1x16x384xf32> to vector<16x384xf32>
    %58 = vector.extract_strided_slice %57 {offsets = [0, 0], sizes = [16, 128], strides = [1, 1]} : vector<16x384xf32> to vector<16x128xf32>
    %59 = vector.extract_strided_slice %55 {offsets = [0, 0], sizes = [16, 128], strides = [1, 1]} : vector<16x384xf32> to vector<16x128xf32>
    %60 = arith.addf %58, %59 : vector<16x128xf32>
    %61 = arith.negf %60 : vector<16x128xf32>
    %62 = math.exp %61 : vector<16x128xf32>
    %cst_28 = arith.constant 1.000000e+00 : f32
    %63 = vector.broadcast %cst_28 : f32 to vector<16x128xf32>
    %64 = arith.addf %63, %62 : vector<16x128xf32>
    %65 = arith.divf %63, %64 : vector<16x128xf32>
    %66 = vector.extract_strided_slice %57 {offsets = [0, 128], sizes = [16, 128], strides = [1, 1]} : vector<16x384xf32> to vector<16x128xf32>
    %67 = vector.extract_strided_slice %55 {offsets = [0, 128], sizes = [16, 128], strides = [1, 1]} : vector<16x384xf32> to vector<16x128xf32>
    %68 = arith.addf %66, %67 : vector<16x128xf32>
    %69 = arith.negf %68 : vector<16x128xf32>
    %70 = math.exp %69 : vector<16x128xf32>
    %cst_29 = arith.constant 1.000000e+00 : f32
    %71 = vector.broadcast %cst_29 : f32 to vector<16x128xf32>
    %72 = arith.addf %71, %70 : vector<16x128xf32>
    %73 = arith.divf %71, %72 : vector<16x128xf32>
    %74 = vector.extract_strided_slice %57 {offsets = [0, 256], sizes = [16, 128], strides = [1, 1]} : vector<16x384xf32> to vector<16x128xf32>
    %75 = vector.extract_strided_slice %55 {offsets = [0, 256], sizes = [16, 128], strides = [1, 1]} : vector<16x384xf32> to vector<16x128xf32>
    %76 = arith.mulf %65, %75 : vector<16x128xf32>
    %77 = arith.addf %74, %76 : vector<16x128xf32>
    %78 = math.tanh %77 : vector<16x128xf32>
    %cst_30 = arith.constant 1.000000e+00 : f32
    %79 = vector.broadcast %cst_30 : f32 to vector<16x128xf32>
    %80 = arith.subf %79, %73 : vector<16x128xf32>
    %81 = arith.mulf %80, %78 : vector<16x128xf32>
    %82 = arith.mulf %73, %53 : vector<16x128xf32>
    %83 = arith.addf %81, %82 : vector<16x128xf32>
    %84 = arith.truncf %83 : vector<16x128xf32> to vector<16x128xbf16>
    %c1_31 = arith.constant 1 : index
    %c0_32 = arith.constant 0 : index
    %c0_33 = arith.constant 0 : index
    %85 = vector.load %arg7[%c1_31, %c0_32, %c0_33] : memref<8x16x128xbf16, #tpu.memory_space<vmem>>, vector<1x16x128xbf16>
    %86 = vector.shape_cast %85 : vector<1x16x128xbf16> to vector<16x128xbf16>
    %87 = vector.shape_cast %84 : vector<16x128xbf16> to vector<1x16x128xbf16>
    tpu.vector_store %arg7[%c1_31, %c0_32, %c0_33], %87 {strides = array<i32>} : memref<8x16x128xbf16, #tpu.memory_space<vmem>>, vector<1x16x128xbf16>,
    %88 = vector.extract_strided_slice %10 {offsets = [2, 0, 0], sizes = [1, 16, 1], strides = [1, 1, 1]} : vector<8x16x1xf32> to vector<1x16x1xf32>
    %89 = vector.shape_cast %88 : vector<1x16x1xf32> to vector<16x1xf32>
    %90 = vector.broadcast %89 : vector<16x1xf32> to vector<16x128xf32>
    %91 = arith.mulf %83, %90 : vector<16x128xf32>
    %92 = arith.truncf %91 : vector<16x128xf32> to vector<16x128xbf16>
    %cst_34 = arith.constant dense<0.000000e+00> : vector<16x384xf32>
    %93 = tpu.matmul %92, %9, %cst_34 {dimension_numbers = #tpu.dot_dimension_numbers<[1], [0], [0], [1], [0, 0, 1, 1], [], []>} : vector<16x128xbf16>, vector<128x384xbf16>, vector<16x384xf32> -> vector<16x384xf32>
    %c2 = arith.constant 2 : index
    %c0_35 = arith.constant 0 : index
    %c0_36 = arith.constant 0 : index
    %94 = vector.load %arg9[%c2, %c0_35, %c0_36] : memref<8x16x384xf32, #tpu.memory_space<vmem>>, vector<1x16x384xf32>
    %95 = vector.shape_cast %94 : vector<1x16x384xf32> to vector<16x384xf32>
    %96 = vector.extract_strided_slice %95 {offsets = [0, 0], sizes = [16, 128], strides = [1, 1]} : vector<16x384xf32> to vector<16x128xf32>
    %97 = vector.extract_strided_slice %93 {offsets = [0, 0], sizes = [16, 128], strides = [1, 1]} : vector<16x384xf32> to vector<16x128xf32>
    %98 = arith.addf %96, %97 : vector<16x128xf32>
    %99 = arith.negf %98 : vector<16x128xf32>
    %100 = math.exp %99 : vector<16x128xf32>
    %cst_37 = arith.constant 1.000000e+00 : f32
    %101 = vector.broadcast %cst_37 : f32 to vector<16x128xf32>
    %102 = arith.addf %101, %100 : vector<16x128xf32>
    %103 = arith.divf %101, %102 : vector<16x128xf32>
    %104 = vector.extract_strided_slice %95 {offsets = [0, 128], sizes = [16, 128], strides = [1, 1]} : vector<16x384xf32> to vector<16x128xf32>
    %105 = vector.extract_strided_slice %93 {offsets = [0, 128], sizes = [16, 128], strides = [1, 1]} : vector<16x384xf32> to vector<16x128xf32>
    %106 = arith.addf %104, %105 : vector<16x128xf32>
    %107 = arith.negf %106 : vector<16x128xf32>
    %108 = math.exp %107 : vector<16x128xf32>
    %cst_38 = arith.constant 1.000000e+00 : f32
    %109 = vector.broadcast %cst_38 : f32 to vector<16x128xf32>
    %110 = arith.addf %109, %108 : vector<16x128xf32>
    %111 = arith.divf %109, %110 : vector<16x128xf32>
    %112 = vector.extract_strided_slice %95 {offsets = [0, 256], sizes = [16, 128], strides = [1, 1]} : vector<16x384xf32> to vector<16x128xf32>
    %113 = vector.extract_strided_slice %93 {offsets = [0, 256], sizes = [16, 128], strides = [1, 1]} : vector<16x384xf32> to vector<16x128xf32>
    %114 = arith.mulf %103, %113 : vector<16x128xf32>
    %115 = arith.addf %112, %114 : vector<16x128xf32>
    %116 = math.tanh %115 : vector<16x128xf32>
    %cst_39 = arith.constant 1.000000e+00 : f32
    %117 = vector.broadcast %cst_39 : f32 to vector<16x128xf32>
    %118 = arith.subf %117, %111 : vector<16x128xf32>
    %119 = arith.mulf %118, %116 : vector<16x128xf32>
    %120 = arith.mulf %111, %91 : vector<16x128xf32>
    %121 = arith.addf %119, %120 : vector<16x128xf32>
    %122 = arith.truncf %121 : vector<16x128xf32> to vector<16x128xbf16>
    %c2_40 = arith.constant 2 : index
    %c0_41 = arith.constant 0 : index
    %c0_42 = arith.constant 0 : index
    %123 = vector.load %arg7[%c2_40, %c0_41, %c0_42] : memref<8x16x128xbf16, #tpu.memory_space<vmem>>, vector<1x16x128xbf16>
    %124 = vector.shape_cast %123 : vector<1x16x128xbf16> to vector<16x128xbf16>
    %125 = vector.shape_cast %122 : vector<16x128xbf16> to vector<1x16x128xbf16>
    tpu.vector_store %arg7[%c2_40, %c0_41, %c0_42], %125 {strides = array<i32>} : memref<8x16x128xbf16, #tpu.memory_space<vmem>>, vector<1x16x128xbf16>,
    %126 = vector.extract_strided_slice %10 {offsets = [3, 0, 0], sizes = [1, 16, 1], strides = [1, 1, 1]} : vector<8x16x1xf32> to vector<1x16x1xf32>
    %127 = vector.shape_cast %126 : vector<1x16x1xf32> to vector<16x1xf32>
    %128 = vector.broadcast %127 : vector<16x1xf32> to vector<16x128xf32>
    %129 = arith.mulf %121, %128 : vector<16x128xf32>
    %130 = arith.truncf %129 : vector<16x128xf32> to vector<16x128xbf16>
    %cst_43 = arith.constant dense<0.000000e+00> : vector<16x384xf32>
    %131 = tpu.matmul %130, %9, %cst_43 {dimension_numbers = #tpu.dot_dimension_numbers<[1], [0], [0], [1], [0, 0, 1, 1], [], []>} : vector<16x128xbf16>, vector<128x384xbf16>, vector<16x384xf32> -> vector<16x384xf32>
    %c3 = arith.constant 3 : index
    %c0_44 = arith.constant 0 : index
    %c0_45 = arith.constant 0 : index
    %132 = vector.load %arg9[%c3, %c0_44, %c0_45] : memref<8x16x384xf32, #tpu.memory_space<vmem>>, vector<1x16x384xf32>
    %133 = vector.shape_cast %132 : vector<1x16x384xf32> to vector<16x384xf32>
    %134 = vector.extract_strided_slice %133 {offsets = [0, 0], sizes = [16, 128], strides = [1, 1]} : vector<16x384xf32> to vector<16x128xf32>
    %135 = vector.extract_strided_slice %131 {offsets = [0, 0], sizes = [16, 128], strides = [1, 1]} : vector<16x384xf32> to vector<16x128xf32>
    %136 = arith.addf %134, %135 : vector<16x128xf32>
    %137 = arith.negf %136 : vector<16x128xf32>
    %138 = math.exp %137 : vector<16x128xf32>
    %cst_46 = arith.constant 1.000000e+00 : f32
    %139 = vector.broadcast %cst_46 : f32 to vector<16x128xf32>
    %140 = arith.addf %139, %138 : vector<16x128xf32>
    %141 = arith.divf %139, %140 : vector<16x128xf32>
    %142 = vector.extract_strided_slice %133 {offsets = [0, 128], sizes = [16, 128], strides = [1, 1]} : vector<16x384xf32> to vector<16x128xf32>
    %143 = vector.extract_strided_slice %131 {offsets = [0, 128], sizes = [16, 128], strides = [1, 1]} : vector<16x384xf32> to vector<16x128xf32>
    %144 = arith.addf %142, %143 : vector<16x128xf32>
    %145 = arith.negf %144 : vector<16x128xf32>
    %146 = math.exp %145 : vector<16x128xf32>
    %cst_47 = arith.constant 1.000000e+00 : f32
    %147 = vector.broadcast %cst_47 : f32 to vector<16x128xf32>
    %148 = arith.addf %147, %146 : vector<16x128xf32>
    %149 = arith.divf %147, %148 : vector<16x128xf32>
    %150 = vector.extract_strided_slice %133 {offsets = [0, 256], sizes = [16, 128], strides = [1, 1]} : vector<16x384xf32> to vector<16x128xf32>
    %151 = vector.extract_strided_slice %131 {offsets = [0, 256], sizes = [16, 128], strides = [1, 1]} : vector<16x384xf32> to vector<16x128xf32>
    %152 = arith.mulf %141, %151 : vector<16x128xf32>
    %153 = arith.addf %150, %152 : vector<16x128xf32>
    %154 = math.tanh %153 : vector<16x128xf32>
    %cst_48 = arith.constant 1.000000e+00 : f32
    %155 = vector.broadcast %cst_48 : f32 to vector<16x128xf32>
    %156 = arith.subf %155, %149 : vector<16x128xf32>
    %157 = arith.mulf %156, %154 : vector<16x128xf32>
    %158 = arith.mulf %149, %129 : vector<16x128xf32>
    %159 = arith.addf %157, %158 : vector<16x128xf32>
    %160 = arith.truncf %159 : vector<16x128xf32> to vector<16x128xbf16>
    %c3_49 = arith.constant 3 : index
    %c0_50 = arith.constant 0 : index
    %c0_51 = arith.constant 0 : index
    %161 = vector.load %arg7[%c3_49, %c0_50, %c0_51] : memref<8x16x128xbf16, #tpu.memory_space<vmem>>, vector<1x16x128xbf16>
    %162 = vector.shape_cast %161 : vector<1x16x128xbf16> to vector<16x128xbf16>
    %163 = vector.shape_cast %160 : vector<16x128xbf16> to vector<1x16x128xbf16>
    tpu.vector_store %arg7[%c3_49, %c0_50, %c0_51], %163 {strides = array<i32>} : memref<8x16x128xbf16, #tpu.memory_space<vmem>>, vector<1x16x128xbf16>,
    %164 = vector.extract_strided_slice %10 {offsets = [4, 0, 0], sizes = [1, 16, 1], strides = [1, 1, 1]} : vector<8x16x1xf32> to vector<1x16x1xf32>
    %165 = vector.shape_cast %164 : vector<1x16x1xf32> to vector<16x1xf32>
    %166 = vector.broadcast %165 : vector<16x1xf32> to vector<16x128xf32>
    %167 = arith.mulf %159, %166 : vector<16x128xf32>
    %168 = arith.truncf %167 : vector<16x128xf32> to vector<16x128xbf16>
    %cst_52 = arith.constant dense<0.000000e+00> : vector<16x384xf32>
    %169 = tpu.matmul %168, %9, %cst_52 {dimension_numbers = #tpu.dot_dimension_numbers<[1], [0], [0], [1], [0, 0, 1, 1], [], []>} : vector<16x128xbf16>, vector<128x384xbf16>, vector<16x384xf32> -> vector<16x384xf32>
    %c4 = arith.constant 4 : index
    %c0_53 = arith.constant 0 : index
    %c0_54 = arith.constant 0 : index
    %170 = vector.load %arg9[%c4, %c0_53, %c0_54] : memref<8x16x384xf32, #tpu.memory_space<vmem>>, vector<1x16x384xf32>
    %171 = vector.shape_cast %170 : vector<1x16x384xf32> to vector<16x384xf32>
    %172 = vector.extract_strided_slice %171 {offsets = [0, 0], sizes = [16, 128], strides = [1, 1]} : vector<16x384xf32> to vector<16x128xf32>
    %173 = vector.extract_strided_slice %169 {offsets = [0, 0], sizes = [16, 128], strides = [1, 1]} : vector<16x384xf32> to vector<16x128xf32>
    %174 = arith.addf %172, %173 : vector<16x128xf32>
    %175 = arith.negf %174 : vector<16x128xf32>
    %176 = math.exp %175 : vector<16x128xf32>
    %cst_55 = arith.constant 1.000000e+00 : f32
    %177 = vector.broadcast %cst_55 : f32 to vector<16x128xf32>
    %178 = arith.addf %177, %176 : vector<16x128xf32>
    %179 = arith.divf %177, %178 : vector<16x128xf32>
    %180 = vector.extract_strided_slice %171 {offsets = [0, 128], sizes = [16, 128], strides = [1, 1]} : vector<16x384xf32> to vector<16x128xf32>
    %181 = vector.extract_strided_slice %169 {offsets = [0, 128], sizes = [16, 128], strides = [1, 1]} : vector<16x384xf32> to vector<16x128xf32>
    %182 = arith.addf %180, %181 : vector<16x128xf32>
    %183 = arith.negf %182 : vector<16x128xf32>
    %184 = math.exp %183 : vector<16x128xf32>
    %cst_56 = arith.constant 1.000000e+00 : f32
    %185 = vector.broadcast %cst_56 : f32 to vector<16x128xf32>
    %186 = arith.addf %185, %184 : vector<16x128xf32>
    %187 = arith.divf %185, %186 : vector<16x128xf32>
    %188 = vector.extract_strided_slice %171 {offsets = [0, 256], sizes = [16, 128], strides = [1, 1]} : vector<16x384xf32> to vector<16x128xf32>
    %189 = vector.extract_strided_slice %169 {offsets = [0, 256], sizes = [16, 128], strides = [1, 1]} : vector<16x384xf32> to vector<16x128xf32>
    %190 = arith.mulf %179, %189 : vector<16x128xf32>
    %191 = arith.addf %188, %190 : vector<16x128xf32>
    %192 = math.tanh %191 : vector<16x128xf32>
    %cst_57 = arith.constant 1.000000e+00 : f32
    %193 = vector.broadcast %cst_57 : f32 to vector<16x128xf32>
    %194 = arith.subf %193, %187 : vector<16x128xf32>
    %195 = arith.mulf %194, %192 : vector<16x128xf32>
    %196 = arith.mulf %187, %167 : vector<16x128xf32>
    %197 = arith.addf %195, %196 : vector<16x128xf32>
    %198 = arith.truncf %197 : vector<16x128xf32> to vector<16x128xbf16>
    %c4_58 = arith.constant 4 : index
    %c0_59 = arith.constant 0 : index
    %c0_60 = arith.constant 0 : index
    %199 = vector.load %arg7[%c4_58, %c0_59, %c0_60] : memref<8x16x128xbf16, #tpu.memory_space<vmem>>, vector<1x16x128xbf16>
    %200 = vector.shape_cast %199 : vector<1x16x128xbf16> to vector<16x128xbf16>
    %201 = vector.shape_cast %198 : vector<16x128xbf16> to vector<1x16x128xbf16>
    tpu.vector_store %arg7[%c4_58, %c0_59, %c0_60], %201 {strides = array<i32>} : memref<8x16x128xbf16, #tpu.memory_space<vmem>>, vector<1x16x128xbf16>,
    %202 = vector.extract_strided_slice %10 {offsets = [5, 0, 0], sizes = [1, 16, 1], strides = [1, 1, 1]} : vector<8x16x1xf32> to vector<1x16x1xf32>
    %203 = vector.shape_cast %202 : vector<1x16x1xf32> to vector<16x1xf32>
    %204 = vector.broadcast %203 : vector<16x1xf32> to vector<16x128xf32>
    %205 = arith.mulf %197, %204 : vector<16x128xf32>
    %206 = arith.truncf %205 : vector<16x128xf32> to vector<16x128xbf16>
    %cst_61 = arith.constant dense<0.000000e+00> : vector<16x384xf32>
    %207 = tpu.matmul %206, %9, %cst_61 {dimension_numbers = #tpu.dot_dimension_numbers<[1], [0], [0], [1], [0, 0, 1, 1], [], []>} : vector<16x128xbf16>, vector<128x384xbf16>, vector<16x384xf32> -> vector<16x384xf32>
    %c5 = arith.constant 5 : index
    %c0_62 = arith.constant 0 : index
    %c0_63 = arith.constant 0 : index
    %208 = vector.load %arg9[%c5, %c0_62, %c0_63] : memref<8x16x384xf32, #tpu.memory_space<vmem>>, vector<1x16x384xf32>
    %209 = vector.shape_cast %208 : vector<1x16x384xf32> to vector<16x384xf32>
    %210 = vector.extract_strided_slice %209 {offsets = [0, 0], sizes = [16, 128], strides = [1, 1]} : vector<16x384xf32> to vector<16x128xf32>
    %211 = vector.extract_strided_slice %207 {offsets = [0, 0], sizes = [16, 128], strides = [1, 1]} : vector<16x384xf32> to vector<16x128xf32>
    %212 = arith.addf %210, %211 : vector<16x128xf32>
    %213 = arith.negf %212 : vector<16x128xf32>
    %214 = math.exp %213 : vector<16x128xf32>
    %cst_64 = arith.constant 1.000000e+00 : f32
    %215 = vector.broadcast %cst_64 : f32 to vector<16x128xf32>
    %216 = arith.addf %215, %214 : vector<16x128xf32>
    %217 = arith.divf %215, %216 : vector<16x128xf32>
    %218 = vector.extract_strided_slice %209 {offsets = [0, 128], sizes = [16, 128], strides = [1, 1]} : vector<16x384xf32> to vector<16x128xf32>
    %219 = vector.extract_strided_slice %207 {offsets = [0, 128], sizes = [16, 128], strides = [1, 1]} : vector<16x384xf32> to vector<16x128xf32>
    %220 = arith.addf %218, %219 : vector<16x128xf32>
    %221 = arith.negf %220 : vector<16x128xf32>
    %222 = math.exp %221 : vector<16x128xf32>
    %cst_65 = arith.constant 1.000000e+00 : f32
    %223 = vector.broadcast %cst_65 : f32 to vector<16x128xf32>
    %224 = arith.addf %223, %222 : vector<16x128xf32>
    %225 = arith.divf %223, %224 : vector<16x128xf32>
    %226 = vector.extract_strided_slice %209 {offsets = [0, 256], sizes = [16, 128], strides = [1, 1]} : vector<16x384xf32> to vector<16x128xf32>
    %227 = vector.extract_strided_slice %207 {offsets = [0, 256], sizes = [16, 128], strides = [1, 1]} : vector<16x384xf32> to vector<16x128xf32>
    %228 = arith.mulf %217, %227 : vector<16x128xf32>
    %229 = arith.addf %226, %228 : vector<16x128xf32>
    %230 = math.tanh %229 : vector<16x128xf32>
    %cst_66 = arith.constant 1.000000e+00 : f32
    %231 = vector.broadcast %cst_66 : f32 to vector<16x128xf32>
    %232 = arith.subf %231, %225 : vector<16x128xf32>
    %233 = arith.mulf %232, %230 : vector<16x128xf32>
    %234 = arith.mulf %225, %205 : vector<16x128xf32>
    %235 = arith.addf %233, %234 : vector<16x128xf32>
    %236 = arith.truncf %235 : vector<16x128xf32> to vector<16x128xbf16>
    %c5_67 = arith.constant 5 : index
    %c0_68 = arith.constant 0 : index
    %c0_69 = arith.constant 0 : index
    %237 = vector.load %arg7[%c5_67, %c0_68, %c0_69] : memref<8x16x128xbf16, #tpu.memory_space<vmem>>, vector<1x16x128xbf16>
    %238 = vector.shape_cast %237 : vector<1x16x128xbf16> to vector<16x128xbf16>
    %239 = vector.shape_cast %236 : vector<16x128xbf16> to vector<1x16x128xbf16>
    tpu.vector_store %arg7[%c5_67, %c0_68, %c0_69], %239 {strides = array<i32>} : memref<8x16x128xbf16, #tpu.memory_space<vmem>>, vector<1x16x128xbf16>,
    %240 = vector.extract_strided_slice %10 {offsets = [6, 0, 0], sizes = [1, 16, 1], strides = [1, 1, 1]} : vector<8x16x1xf32> to vector<1x16x1xf32>
    %241 = vector.shape_cast %240 : vector<1x16x1xf32> to vector<16x1xf32>
    %242 = vector.broadcast %241 : vector<16x1xf32> to vector<16x128xf32>
    %243 = arith.mulf %235, %242 : vector<16x128xf32>
    %244 = arith.truncf %243 : vector<16x128xf32> to vector<16x128xbf16>
    %cst_70 = arith.constant dense<0.000000e+00> : vector<16x384xf32>
    %245 = tpu.matmul %244, %9, %cst_70 {dimension_numbers = #tpu.dot_dimension_numbers<[1], [0], [0], [1], [0, 0, 1, 1], [], []>} : vector<16x128xbf16>, vector<128x384xbf16>, vector<16x384xf32> -> vector<16x384xf32>
    %c6 = arith.constant 6 : index
    %c0_71 = arith.constant 0 : index
    %c0_72 = arith.constant 0 : index
    %246 = vector.load %arg9[%c6, %c0_71, %c0_72] : memref<8x16x384xf32, #tpu.memory_space<vmem>>, vector<1x16x384xf32>
    %247 = vector.shape_cast %246 : vector<1x16x384xf32> to vector<16x384xf32>
    %248 = vector.extract_strided_slice %247 {offsets = [0, 0], sizes = [16, 128], strides = [1, 1]} : vector<16x384xf32> to vector<16x128xf32>
    %249 = vector.extract_strided_slice %245 {offsets = [0, 0], sizes = [16, 128], strides = [1, 1]} : vector<16x384xf32> to vector<16x128xf32>
    %250 = arith.addf %248, %249 : vector<16x128xf32>
    %251 = arith.negf %250 : vector<16x128xf32>
    %252 = math.exp %251 : vector<16x128xf32>
    %cst_73 = arith.constant 1.000000e+00 : f32
    %253 = vector.broadcast %cst_73 : f32 to vector<16x128xf32>
    %254 = arith.addf %253, %252 : vector<16x128xf32>
    %255 = arith.divf %253, %254 : vector<16x128xf32>
    %256 = vector.extract_strided_slice %247 {offsets = [0, 128], sizes = [16, 128], strides = [1, 1]} : vector<16x384xf32> to vector<16x128xf32>
    %257 = vector.extract_strided_slice %245 {offsets = [0, 128], sizes = [16, 128], strides = [1, 1]} : vector<16x384xf32> to vector<16x128xf32>
    %258 = arith.addf %256, %257 : vector<16x128xf32>
    %259 = arith.negf %258 : vector<16x128xf32>
    %260 = math.exp %259 : vector<16x128xf32>
    %cst_74 = arith.constant 1.000000e+00 : f32
    %261 = vector.broadcast %cst_74 : f32 to vector<16x128xf32>
    %262 = arith.addf %261, %260 : vector<16x128xf32>
    %263 = arith.divf %261, %262 : vector<16x128xf32>
    %264 = vector.extract_strided_slice %247 {offsets = [0, 256], sizes = [16, 128], strides = [1, 1]} : vector<16x384xf32> to vector<16x128xf32>
    %265 = vector.extract_strided_slice %245 {offsets = [0, 256], sizes = [16, 128], strides = [1, 1]} : vector<16x384xf32> to vector<16x128xf32>
    %266 = arith.mulf %255, %265 : vector<16x128xf32>
    %267 = arith.addf %264, %266 : vector<16x128xf32>
    %268 = math.tanh %267 : vector<16x128xf32>
    %cst_75 = arith.constant 1.000000e+00 : f32
    %269 = vector.broadcast %cst_75 : f32 to vector<16x128xf32>
    %270 = arith.subf %269, %263 : vector<16x128xf32>
    %271 = arith.mulf %270, %268 : vector<16x128xf32>
    %272 = arith.mulf %263, %243 : vector<16x128xf32>
    %273 = arith.addf %271, %272 : vector<16x128xf32>
    %274 = arith.truncf %273 : vector<16x128xf32> to vector<16x128xbf16>
    %c6_76 = arith.constant 6 : index
    %c0_77 = arith.constant 0 : index
    %c0_78 = arith.constant 0 : index
    %275 = vector.load %arg7[%c6_76, %c0_77, %c0_78] : memref<8x16x128xbf16, #tpu.memory_space<vmem>>, vector<1x16x128xbf16>
    %276 = vector.shape_cast %275 : vector<1x16x128xbf16> to vector<16x128xbf16>
    %277 = vector.shape_cast %274 : vector<16x128xbf16> to vector<1x16x128xbf16>
    tpu.vector_store %arg7[%c6_76, %c0_77, %c0_78], %277 {strides = array<i32>} : memref<8x16x128xbf16, #tpu.memory_space<vmem>>, vector<1x16x128xbf16>,
    %278 = vector.extract_strided_slice %10 {offsets = [7, 0, 0], sizes = [1, 16, 1], strides = [1, 1, 1]} : vector<8x16x1xf32> to vector<1x16x1xf32>
    %279 = vector.shape_cast %278 : vector<1x16x1xf32> to vector<16x1xf32>
    %280 = vector.broadcast %279 : vector<16x1xf32> to vector<16x128xf32>
    %281 = arith.mulf %273, %280 : vector<16x128xf32>
    %282 = arith.truncf %281 : vector<16x128xf32> to vector<16x128xbf16>
    %cst_79 = arith.constant dense<0.000000e+00> : vector<16x384xf32>
    %283 = tpu.matmul %282, %9, %cst_79 {dimension_numbers = #tpu.dot_dimension_numbers<[1], [0], [0], [1], [0, 0, 1, 1], [], []>} : vector<16x128xbf16>, vector<128x384xbf16>, vector<16x384xf32> -> vector<16x384xf32>
    %c7 = arith.constant 7 : index
    %c0_80 = arith.constant 0 : index
    %c0_81 = arith.constant 0 : index
    %284 = vector.load %arg9[%c7, %c0_80, %c0_81] : memref<8x16x384xf32, #tpu.memory_space<vmem>>, vector<1x16x384xf32>
    %285 = vector.shape_cast %284 : vector<1x16x384xf32> to vector<16x384xf32>
    %286 = vector.extract_strided_slice %285 {offsets = [0, 0], sizes = [16, 128], strides = [1, 1]} : vector<16x384xf32> to vector<16x128xf32>
    %287 = vector.extract_strided_slice %283 {offsets = [0, 0], sizes = [16, 128], strides = [1, 1]} : vector<16x384xf32> to vector<16x128xf32>
    %288 = arith.addf %286, %287 : vector<16x128xf32>
    %289 = arith.negf %288 : vector<16x128xf32>
    %290 = math.exp %289 : vector<16x128xf32>
    %cst_82 = arith.constant 1.000000e+00 : f32
    %291 = vector.broadcast %cst_82 : f32 to vector<16x128xf32>
    %292 = arith.addf %291, %290 : vector<16x128xf32>
    %293 = arith.divf %291, %292 : vector<16x128xf32>
    %294 = vector.extract_strided_slice %285 {offsets = [0, 128], sizes = [16, 128], strides = [1, 1]} : vector<16x384xf32> to vector<16x128xf32>
    %295 = vector.extract_strided_slice %283 {offsets = [0, 128], sizes = [16, 128], strides = [1, 1]} : vector<16x384xf32> to vector<16x128xf32>
    %296 = arith.addf %294, %295 : vector<16x128xf32>
    %297 = arith.negf %296 : vector<16x128xf32>
    %298 = math.exp %297 : vector<16x128xf32>
    %cst_83 = arith.constant 1.000000e+00 : f32
    %299 = vector.broadcast %cst_83 : f32 to vector<16x128xf32>
    %300 = arith.addf %299, %298 : vector<16x128xf32>
    %301 = arith.divf %299, %300 : vector<16x128xf32>
    %302 = vector.extract_strided_slice %285 {offsets = [0, 256], sizes = [16, 128], strides = [1, 1]} : vector<16x384xf32> to vector<16x128xf32>
    %303 = vector.extract_strided_slice %283 {offsets = [0, 256], sizes = [16, 128], strides = [1, 1]} : vector<16x384xf32> to vector<16x128xf32>
    %304 = arith.mulf %293, %303 : vector<16x128xf32>
    %305 = arith.addf %302, %304 : vector<16x128xf32>
    %306 = math.tanh %305 : vector<16x128xf32>
    %cst_84 = arith.constant 1.000000e+00 : f32
    %307 = vector.broadcast %cst_84 : f32 to vector<16x128xf32>
    %308 = arith.subf %307, %301 : vector<16x128xf32>
    %309 = arith.mulf %308, %306 : vector<16x128xf32>
    %310 = arith.mulf %301, %281 : vector<16x128xf32>
    %311 = arith.addf %309, %310 : vector<16x128xf32>
    %312 = arith.truncf %311 : vector<16x128xf32> to vector<16x128xbf16>
    %c7_85 = arith.constant 7 : index
    %c0_86 = arith.constant 0 : index
    %c0_87 = arith.constant 0 : index
    %313 = vector.load %arg7[%c7_85, %c0_86, %c0_87] : memref<8x16x128xbf16, #tpu.memory_space<vmem>>, vector<1x16x128xbf16>
    %314 = vector.shape_cast %313 : vector<1x16x128xbf16> to vector<16x128xbf16>
    %315 = vector.shape_cast %312 : vector<16x128xbf16> to vector<1x16x128xbf16>
    tpu.vector_store %arg7[%c7_85, %c0_86, %c0_87], %315 {strides = array<i32>} : memref<8x16x128xbf16, #tpu.memory_space<vmem>>, vector<1x16x128xbf16>,
    %c0_88 = arith.constant 0 : index
    %c0_89 = arith.constant 0 : index
    %316 = vector.load %arg10[%c0_88, %c0_89] : memref<16x128xf32, #tpu.memory_space<vmem>>, vector<16x128xf32>
    tpu.vector_store %arg10[%c0_88, %c0_89], %311 {strides = array<i32>} : memref<16x128xf32, #tpu.memory_space<vmem>>, vector<16x128xf32>,
    %c0_i32_90 = arith.constant 0 : i32
    %317 = arith.cmpi eq, %arg1, %c0_i32_90 : i32
    %318 = arith.extui %317 : i1 to i32
    %c0_i32_91 = arith.constant 0 : i32
    %319 = arith.cmpi ne, %318, %c0_i32_91 : i32
    scf.if %319 {
      %c0_92 = arith.constant 0 : index
      %c0_93 = arith.constant 0 : index
      %320 = vector.load %arg8[%c0_92, %c0_93] : memref<16x128xf32, #tpu.memory_space<vmem>>, vector<16x128xf32>
      tpu.vector_store %arg8[%c0_92, %c0_93], %311 {strides = array<i32>} : memref<16x128xf32, #tpu.memory_space<vmem>>, vector<16x128xf32>,
    } else {
    }
    return
  }
  func.func @transform_0(%arg0: i32, %arg1: i32) -> (i32, i32, i32) {
    %c0_i32 = arith.constant 0 : i32
    %c0_i32_0 = arith.constant 0 : i32
    return %arg1, %arg0, %c0_i32 : i32, i32, i32
  }
  func.func @transform_1(%arg0: i32, %arg1: i32) -> (i32, i32, i32) {
    %c0_i32 = arith.constant 0 : i32
    %c0_i32_0 = arith.constant 0 : i32
    return %arg1, %arg0, %c0_i32 : i32, i32, i32
  }
  func.func @transform_2(%arg0: i32, %arg1: i32) -> (i32, i32) {
    %c0_i32 = arith.constant 0 : i32
    %c0_i32_0 = arith.constant 0 : i32
    return %arg0, %c0_i32 : i32, i32
  }
  func.func @transform_3(%arg0: i32, %arg1: i32) -> (i32, i32) {
    %c0_i32 = arith.constant 0 : i32
    %c0_i32_0 = arith.constant 0 : i32
    %c0_i32_1 = arith.constant 0 : i32
    return %c0_i32, %c0_i32_0 : i32, i32
  }
  func.func @transform_4(%arg0: i32, %arg1: i32) -> (i32, i32) {
    %c0_i32 = arith.constant 0 : i32
    %c0_i32_0 = arith.constant 0 : i32
    %c0_i32_1 = arith.constant 0 : i32
    return %c0_i32, %c0_i32_0 : i32, i32
  }
  func.func @transform_5(%arg0: i32, %arg1: i32) -> (i32, i32, i32) {
    %c0_i32 = arith.constant 0 : i32
    %c0_i32_0 = arith.constant 0 : i32
    return %arg1, %arg0, %c0_i32 : i32, i32, i32
  }
  func.func @transform_6(%arg0: i32, %arg1: i32) -> (i32, i32) {
    %c0_i32 = arith.constant 0 : i32
    %c0_i32_0 = arith.constant 0 : i32
    return %arg0, %c0_i32 : i32, i32
  }
}

</mosaic_0001>

<bundles_post_ra>
// kernel: _gru_forward.1
= control target key start
LH: loop header
LB: loop body
LE: loop exit
PB: predicated region body
PF: predicated region fallthrough
CT: control target
= control target key end

     0   :  { %v2262_v0 = vmov 0   ;;  %vm107_vm0 = vcmask 130048   ;;  %s3121_s1 = inlined_call_operand.vmem [shape: f32[8,16,1], index: 1, kind: input, shape index: {}]   ;;  %s3122_s4 = inlined_call_operand.vmem [shape: bf16[128,384], index: 4, kind: input, shape index: {}]   ;;  %s3123_s3 = inlined_call_operand.vmem [shape: bf16[16,384], index: 3, kind: input, shape index: {}]   ;;  %s3124_s0 = inlined_call_operand.vmem [shape: bf16[8,16,16], index: 0, kind: input, shape index: {}]   ;;  %s3125_s2 = inlined_call_operand.vmem [shape: f32[16,128], index: 2, kind: input, shape index: {}, may-alias: {2,6}]   ;;  %s3126_s5 = inlined_call_operand.vmem [shape: bf16[8,16,128], index: 5, kind: output, shape index: {0}]   ;;  %s3127_s6 = inlined_call_operand.vmem [shape: f32[16,128], index: 6, kind: output, shape index: {1}, may-alias: {2,6}]  }
   0x1   :  { %2099 = vset.pattern.permute.xlu0 %v2262_v0  ;;  %v359_v1 = vld [vmem:[%s3121_s1] sm:$0xff]  ;;  %2100 = vset.pattern.permute.xlu1 %v2262_v0  ;;  %v360_v2 = vld [vmem:[%s3121_s1 + $0x8] sm:$0xff]  ;;  %v2049_v4 = vld [vmem:[%s3122_s4 + $0xb0] sm:$0xf0] }
   0x2   :  { %379 = vperm.xlu0 %2099, %v359_v1   ;;  %2101 = vset.pattern.permute.xlu2 %v2262_v0  ;;  %v1960_v3 = vld [vmem:[%s3122_s4 + $0xa8] sm:$0xf]  ;;  %v1948_v5 = vld [vmem:[%s3122_s4 + $0x90] sm:$0xf]  ;;  %v2046_v7 = vld [vmem:[%s3122_s4 + $0x98] sm:$0xf0] }
   0x3   :  { %v2313_v6 = vor.u32 %v2049_v4, %v1960_v3  ;;  %v2319_v8 = vor.u32 %v2046_v7, %v1948_v5  ;;  %v1936_v9 = vld [vmem:[%s3122_s4 + $0x78] sm:$0xf]  ;;  %v2043_v10 = vld [vmem:[%s3122_s4 + $0x80] sm:$0xf0]  ;;  %v365_v11 = vld [vmem:[%s3121_s1 + $0x30] sm:$0xff] }
   0x4   :  { %v2331_v12 = vor.u32 %v2043_v10, %v1936_v9  ;;  %v1924_v13 = vld [vmem:[%s3122_s4 + $0x60] sm:$0xf]  ;;  %v2040_v14 = vld [vmem:[%s3122_s4 + $0x68] sm:$0xf0]  ;;  %v1912_v16 = vld [vmem:[%s3122_s4 + $0x48] sm:$0xf] }
   0x5   :  { %518 = vmatpush.bf16.msra.mxu3 %v2313_v6  ;;  %v2340_v15 = vor.u32 %v2040_v14, %v1924_v13  ;;  %v2037_v17 = vld [vmem:[%s3122_s4 + $0x50] sm:$0xf0]  ;;  %v368_v18 = vld [vmem:[%s3121_s1 + $0x48] sm:$0xff]  ;;  %v1900_v20 = vld [vmem:[%s3122_s4 + $0x30] sm:$0xf] }
   0x6   :  { %v2352_v19 = vor.u32 %v2037_v17, %v1912_v16  ;;  %v2034_v21 = vld [vmem:[%s3122_s4 + $0x38] sm:$0xf0]  ;;  %v1888_v23 = vld [vmem:[%s3122_s4 + $0x18] sm:$0xf]  ;;  %v2031_v24 = vld [vmem:[%s3122_s4 + $0x20] sm:$0xf0] }
   0x7   :  { %v2361_v22 = vor.u32 %v2034_v21, %v1900_v20  ;;  %v371_v25 = vld [vmem:[%s3121_s1 + $0x60] sm:$0xff]  ;;  %v2373_v26 = vor.u32 %v2031_v24, %v1888_v23  ;;  %v2028_v28 = vld [vmem:[%s3122_s4 + $0x8] sm:$0xf0]  ;;  %v1962_v30 = vld [vmem:[%s3122_s4 + $0xb4] sm:$0xf0] }
   0x8   :  { %v1876_v27 = vld [vmem:[%s3122_s4] sm:$0xf]  ;;  %v2048_v29 = vld [vmem:[%s3122_s4 + $0xac] sm:$0xf]  ;;  %v374_v33 = vld [vmem:[%s3121_s1 + $0x78] sm:$0xff] }
   0x9   :  { %519 = vmatpush.bf16.msra.mxu3 %v2319_v8  ;;  %v2388_v31 = vor.u32 %v2028_v28, %v1876_v27  ;;  %v2390_v32 = vor.u32 %v2048_v29, %v1962_v30  ;;  %v2045_v34 = vld [vmem:[%s3122_s4 + $0x94] sm:$0xf]  ;;  %v1950_v35 = vld [vmem:[%s3122_s4 + $0x9c] sm:$0xf0]  ;;  %v2042_v37 = vld [vmem:[%s3122_s4 + $0x7c] sm:$0xf] }
   0xa   :  { %384 = vperm.xlu0 %2099, %v360_v2   ;;  %v2403_v36 = vor.u32 %v2045_v34, %v1950_v35  ;;  %v1938_v38 = vld [vmem:[%s3122_s4 + $0x84] sm:$0xf0]  ;;  %v2039_v40 = vld [vmem:[%s3122_s4 + $0x64] sm:$0xf]  ;;  %v1926_v41 = vld [vmem:[%s3122_s4 + $0x6c] sm:$0xf0] }
   0xb   :  { %v2412_v39 = vor.u32 %v2042_v37, %v1938_v38  ;;  %v2421_v42 = vor.u32 %v2039_v40, %v1926_v41  ;;  %v2036_v43 = vld [vmem:[%s3122_s4 + $0x4c] sm:$0xf]  ;;  %v1914_v44 = vld [vmem:[%s3122_s4 + $0x54] sm:$0xf0]  ;;  %v2033_v46 = vld [vmem:[%s3122_s4 + $0x34] sm:$0xf] }
   0xc   :  { %v2430_v45 = vor.u32 %v2036_v43, %v1914_v44  ;;  %v1902_v47 = vld [vmem:[%s3122_s4 + $0x3c] sm:$0xf0]  ;;  %v2030_v49 = vld [vmem:[%s3122_s4 + $0x1c] sm:$0xf]  ;;  %v1890_v50 = vld [vmem:[%s3122_s4 + $0x24] sm:$0xf0] }
   0xd   :  { %520 = vmatpush.bf16.msra.mxu3 %v2331_v12  ;;  %v2439_v48 = vor.u32 %v2033_v46, %v1902_v47  ;;  %v2448_v51 = vor.u32 %v2030_v49, %v1890_v50  ;;  %v2027_v52 = vld [vmem:[%s3122_s4 + $0x4] sm:$0xf]  ;;  %v1878_v53 = vld [vmem:[%s3122_s4 + $0xc] sm:$0xf0]  ;;  %v1840_v55 = vld [vmem:[%s3123_s3] sm:$0xf] }
   0xe   :  { %v2457_v54 = vor.u32 %v2027_v52, %v1878_v53  ;;  %v2025_v56 = vld [vmem:[%s3123_s3 + $0x8] sm:$0xf0]  ;;  %v2016_v58 = vld [vmem:[%s3124_s0] sm:$0xff]  ;;  %v1968_v59 = vld [vmem:[%s3122_s4 + $0xb0] sm:$0xf] }
   0xf   :  { %v1841_v57 = vor.u32 %v2025_v56, %v1840_v55  ;;  %v2050_v60 = vld [vmem:[%s3122_s4 + $0xb8] sm:$0xf0]  ;;  %v2024_v61 = vld [vmem:[%s3123_s3 + $0x4] sm:$0xf]  ;;  %v1842_v62 = vld [vmem:[%s3123_s3 + $0xc] sm:$0xf0] }
  0x10   :  { %v1845_v63 = vor.u32 %v2024_v61, %v1842_v62  ;;  %v2484_v0 = vor.u32 %v2050_v60, %v1968_v59  ;;  %v1956_v1 = vld [vmem:[%s3122_s4 + $0x98] sm:$0xf]  ;;  %v2047_v2 = vld [vmem:[%s3122_s4 + $0xa0] sm:$0xf0]  ;;  %v1944_v4 = vld [vmem:[%s3122_s4 + $0x80] sm:$0xf] }
  0x11   :  { %521 = vmatpush.bf16.msra.mxu3 %v2340_v15  ;;  %139 = vmatpush.bf16.msra.mxu0 %v1841_v57  ;;  %v2494_v3 = vor.u32 %v2047_v2, %v1956_v1  ;;  %v2044_v5 = vld [vmem:[%s3122_s4 + $0x88] sm:$0xf0]  ;;  %v1932_v10 = vld [vmem:[%s3122_s4 + $0x68] sm:$0xf]  ;;  %v1920_v14 = vld [vmem:[%s3122_s4 + $0x50] sm:$0xf] }
  0x12   :  { %988 = vperm.xlu0 %2099, %v365_v11   ;;  %188 = vmatpush.bf16.msra.mxu1 %v1845_v63  ;;  %v2505_v7 = vor.u32 %v2044_v5, %v1944_v4  ;;  %v2041_v11 = vld [vmem:[%s3122_s4 + $0x70] sm:$0xf0]  ;;  %v2038_v16 = vld [vmem:[%s3122_s4 + $0x58] sm:$0xf0]  ;;  %v27_v17 = vld [vmem:[%s3125_s2] sm:$0xff] }
  0x13   :  { %v2515_v13 = vor.u32 %v2041_v11, %v1932_v10  ;;  %v1848_v20 = vld [vmem:[%s3123_s3 + $0x8] sm:$0xf]  ;;  %v2026_v21 = vld [vmem:[%s3123_s3 + $0x10] sm:$0xf0]  ;;  %v2537_v23 = vor.u32 %v2038_v16, %v1920_v14  ;;  %v1908_v27 = vld [vmem:[%s3122_s4 + $0x38] sm:$0xf] }
  0x14   :  { %1850 = vmatmul.msk.bf16.vlgmr.msra.gmra.mxu0 %vm107_vm0, %v2016_v58  ;;  %v1849_v24 = vor.u32 %v2026_v21, %v1848_v20  ;;  %v2035_v28 = vld [vmem:[%s3122_s4 + $0x40] sm:$0xf0]  ;;  %v1896_v35 = vld [vmem:[%s3122_s4 + $0x20] sm:$0xf]  ;;  %v2032_v37 = vld [vmem:[%s3122_s4 + $0x28] sm:$0xf0] }
  0x15   :  { %522 = vmatpush.bf16.msra.mxu3 %v2352_v19  ;;  %691 = vmatpush.bf16.msrb.mxu0 %v2390_v32  ;;  %v2556_v34 = vor.u32 %v2035_v28, %v1908_v27  ;;  %v361_v38 = vld [vmem:[%s3121_s1 + $0x10] sm:$0xff]  ;;  %v2017_v40 = vld [vmem:[%s3124_s0 + $0x8] sm:$0xff]  ;;  %v2575_v41 = vor.u32 %v2032_v37, %v1896_v35  ;;  %v362_v47 = vld [vmem:[%s3121_s1 + $0x18] sm:$0xff] }
  0x16   :  { %705 = vmatpush.bf16.msrb.mxu1 %v2484_v0  ;;  %237 = vmatpush.bf16.msra.mxu2 %v1849_v24  ;;  %v1884_v43 = vld [vmem:[%s3122_s4 + $0x8] sm:$0xf]  ;;  %v2029_v44 = vld [vmem:[%s3122_s4 + $0x10] sm:$0xf0]  ;;  %v366_v49 = vld [vmem:[%s3121_s1 + $0x38] sm:$0xff] }
  0x17   :  { %1858 = vmatmul.msk.bf16.vlgmr.msra.gmra.mxu1 %vm107_vm0, %v2016_v58  ;;  %666 = vperm.xlu1 %2100, %v361_v38   ;;  %v2589_v46 = vor.u32 %v2029_v44, %v1884_v43  ;;  %v2018_v50 = vld [vmem:[%s3124_s0 + $0x10] sm:$0xff]  ;;  %v372_v53 = vld [vmem:[%s3121_s1 + $0x68] sm:$0xff]  ;;  %v2019_v55 = vld [vmem:[%s3124_s0 + $0x18] sm:$0xff] }
  0x18   :  { %v369_v52 = vld [vmem:[%s3121_s1 + $0x50] sm:$0xff]  ;;  %v2020_v56 = vld [vmem:[%s3124_s0 + $0x20] sm:$0xff]  ;;  %v2021_v57 = vld [vmem:[%s3124_s0 + $0x28] sm:$0xff] }
  0x19   :  { %523 = vmatpush.bf16.msra.mxu3 %v2361_v22  ;;  %692 = vmatpush.bf16.msrb.mxu0 %v2403_v36  ;;  %v2022_v60 = vld [vmem:[%s3124_s0 + $0x30] sm:$0xff]  ;;  %v2023_v14 = vld [vmem:[%s3124_s0 + $0x38] sm:$0xff] }
  0x1a   :  { %1154 = vperm.xlu0 %2099, %v368_v18   ;;  %706 = vmatpush.bf16.msrb.mxu1 %v2494_v3  ;;  %v28_v18 = vld [vmem:[%s3125_s2 + $0x8] sm:$0xff] }
  0x1b   :  { %838 = vmatpush.bf16.msrb.mxu2 %v2313_v6 }
  0x1c   :  { %1866 = vmatmul.msk.bf16.vlgmr.msra.gmra.mxu2 %vm107_vm0, %v2016_v58 }
  0x1d   :  { %524 = vmatpush.bf16.msra.mxu3 %v2373_v26  ;;  %693 = vmatpush.bf16.msrb.mxu0 %v2412_v39 }
  0x1e   :  { %707 = vmatpush.bf16.msrb.mxu1 %v2505_v7 }
  0x1f   :  { %839 = vmatpush.bf16.msrb.mxu2 %v2319_v8  ;;  %671 = vperm.xlu1 %2100, %v362_v47  }
  0x21   :  { %525 = vmatpush.bf16.msra.mxu3 %v2388_v31  ;;  %694 = vmatpush.bf16.msrb.mxu0 %v2421_v42 }
  0x22   :  { %1471 = vperm.xlu0 %2099, %v371_v25   ;;  %708 = vmatpush.bf16.msrb.mxu1 %v2515_v13 }
  0x23   :  { %840 = vmatpush.bf16.msrb.mxu2 %v2331_v12 }
  0x24   :  { %1851 = vmatmul.msk.bf16.gmra.mxu0 %vm107_vm0, %v2017_v40 }
  0x25   :  { %532 = vmatpush.bf16.msrb.mxu3 %v2390_v32  ;;  %695 = vmatpush.bf16.msrb.mxu0 %v2430_v45 }
  0x26   :  { %709 = vmatpush.bf16.msrb.mxu1 %v2537_v23 }
  0x27   :  { %1859 = vmatmul.msk.bf16.gmra.mxu1 %vm107_vm0, %v2017_v40  ;;  %841 = vmatpush.bf16.msrb.mxu2 %v2340_v15 }
  0x28   :  { %993 = vperm.xlu1 %2100, %v366_v49  }
  0x29   :  { %533 = vmatpush.bf16.msrb.mxu3 %v2403_v36  ;;  %696 = vmatpush.bf16.msrb.mxu0 %v2439_v48 }
  0x2a   :  { %1637 = vperm.xlu0 %2099, %v374_v33   ;;  %710 = vmatpush.bf16.msrb.mxu1 %v2556_v34 }
  0x2b   :  { %842 = vmatpush.bf16.msrb.mxu2 %v2352_v19 }
  0x2c   :  { %1867 = vmatmul.msk.bf16.gmra.mxu2 %vm107_vm0, %v2017_v40 }
  0x2d   :  { %534 = vmatpush.bf16.msrb.mxu3 %v2412_v39  ;;  %697 = vmatpush.bf16.msrb.mxu0 %v2448_v51 }
  0x2e   :  { %711 = vmatpush.bf16.msrb.mxu1 %v2575_v41 }
  0x2f   :  { %843 = vmatpush.bf16.msrb.mxu2 %v2361_v22 }
  0x30   :  { %1310 = vperm.xlu1 %2100, %v369_v52  }
  0x31   :  { %535 = vmatpush.bf16.msrb.mxu3 %v2421_v42  ;;  %698 = vmatpush.bf16.msrb.mxu0 %v2457_v54 }
  0x32   :  { %712 = vmatpush.bf16.msrb.mxu1 %v2589_v46 }
  0x33   :  { %844 = vmatpush.bf16.msrb.mxu2 %v2373_v26 }
  0x34   :  { %1852 = vmatmul.msk.bf16.gmra.mxu0 %vm107_vm0, %v2018_v50 }
  0x35   :  { %536 = vmatpush.bf16.msrb.mxu3 %v2430_v45  ;;  %866 = vmatpush.bf16.msra.mxu0 %v2484_v0 }
  0x36   :  { %999 = vmatpush.bf16.msra.mxu1 %v2313_v6 }
  0x37   :  { %1860 = vmatmul.msk.bf16.gmra.mxu1 %vm107_vm0, %v2018_v50  ;;  %845 = vmatpush.bf16.msrb.mxu2 %v2388_v31 }
  0x38   :  { %1476 = vperm.xlu1 %2100, %v372_v53  }
  0x39   :  { %537 = vmatpush.bf16.msrb.mxu3 %v2439_v48  ;;  %867 = vmatpush.bf16.msra.mxu0 %v2494_v3 }
  0x3a   :  { %1000 = vmatpush.bf16.msra.mxu1 %v2319_v8 }
  0x3b   :  { %1013 = vmatpush.bf16.msra.mxu2 %v2390_v32 }
  0x3c   :  { %1868 = vmatmul.msk.bf16.gmra.mxu2 %vm107_vm0, %v2018_v50 }
  0x3d   :  { %538 = vmatpush.bf16.msrb.mxu3 %v2448_v51  ;;  %868 = vmatpush.bf16.msra.mxu0 %v2505_v7 }
  0x3e   :  { %1001 = vmatpush.bf16.msra.mxu1 %v2331_v12 }
  0x3f   :  { %1014 = vmatpush.bf16.msra.mxu2 %v2403_v36 }
  0x41   :  { %539 = vmatpush.bf16.msrb.mxu3 %v2457_v54  ;;  %869 = vmatpush.bf16.msra.mxu0 %v2515_v13 }
  0x42   :  { %1002 = vmatpush.bf16.msra.mxu1 %v2340_v15 }
  0x43   :  { %1015 = vmatpush.bf16.msra.mxu2 %v2412_v39 }
  0x44   :  { %1853 = vmatmul.msk.bf16.gmra.mxu0 %vm107_vm0, %v2019_v55 }
  0x45   :  { %870 = vmatpush.bf16.msra.mxu0 %v2537_v23 }
  0x46   :  { %1003 = vmatpush.bf16.msra.mxu1 %v2352_v19 }
  0x47   :  { %1861 = vmatmul.msk.bf16.gmra.mxu1 %vm107_vm0, %v2019_v55  ;;  %1016 = vmatpush.bf16.msra.mxu2 %v2421_v42 }
  0x49   :  { %871 = vmatpush.bf16.msra.mxu0 %v2556_v34 }
  0x4a   :  { %1004 = vmatpush.bf16.msra.mxu1 %v2361_v22 }
  0x4b   :  { %1017 = vmatpush.bf16.msra.mxu2 %v2430_v45 }
  0x4c   :  { %1869 = vmatmul.msk.bf16.gmra.mxu2 %vm107_vm0, %v2019_v55 }
  0x4d   :  { %872 = vmatpush.bf16.msra.mxu0 %v2575_v41 }
  0x4e   :  { %1005 = vmatpush.bf16.msra.mxu1 %v2373_v26 }
  0x4f   :  { %1018 = vmatpush.bf16.msra.mxu2 %v2439_v48 }
  0x51   :  { %873 = vmatpush.bf16.msra.mxu0 %v2589_v46 }
  0x52   :  { %1006 = vmatpush.bf16.msra.mxu1 %v2388_v31 }
  0x53   :  { %1019 = vmatpush.bf16.msra.mxu2 %v2448_v51 }
  0x54   :  { %1854 = vmatmul.msk.bf16.gmra.mxu0 %vm107_vm0, %v2020_v56 }
  0x57   :  { %1020 = vmatpush.bf16.msra.mxu2 %v2457_v54  ;;  %1862 = vmatmul.msk.bf16.gmra.mxu1 %vm107_vm0, %v2020_v56 }
  0x5c   :  { %1870 = vmatmul.msk.bf16.gmra.mxu2 %vm107_vm0, %v2020_v56 }
  0x64   :  { %1855 = vmatmul.msk.bf16.gmra.mxu0 %vm107_vm0, %v2021_v57 }
  0x67   :  { %1863 = vmatmul.msk.bf16.gmra.mxu1 %vm107_vm0, %v2021_v57 }
  0x6c   :  { %1871 = vmatmul.msk.bf16.gmra.mxu2 %vm107_vm0, %v2021_v57 }
  0x74   :  { %v380_v9 = vpop.permute.xlu0 %379  ;;  %1856 = vmatmul.msk.bf16.gmra.mxu0 %vm107_vm0, %v2022_v60 }
  0x75   :  { %v2546_v29 = vmul.f32 %v380_v9, %v27_v17 }
  0x77   :  { %1864 = vmatmul.msk.bf16.gmra.mxu1 %vm107_vm0, %v2022_v60 }
  0x7c   :  { %v385_v25 = vpop.permute.xlu0 %384  ;;  %1872 = vmatmul.msk.bf16.gmra.mxu2 %vm107_vm0, %v2022_v60 }
  0x7d   :  { %v2548_v30 = vmul.f32 %v385_v25, %v28_v18 }
  0x7f   :  { %v2554_v33 = vpack.c.bf16 %v2548_v30, %v2546_v29 }
  0x81   :  { %526 = vmatmul.bf16.vlgmr.msra.gmra.mxu3 %v2554_v33 }
  0x82   :  { %546 = vmatpush.bf16.msra.mxu3 %v2484_v0 }
  0x84   :  { %1857 = vmatmul.msk.bf16.gmra.mxu0 %vm107_vm0, %v2023_v14 }
  0x86   :  { %547 = vmatpush.bf16.msra.mxu3 %v2494_v3 }
  0x87   :  { %1865 = vmatmul.msk.bf16.gmra.mxu1 %vm107_vm0, %v2023_v14 }
  0x8a   :  { %548 = vmatpush.bf16.msra.mxu3 %v2505_v7 }
  0x8c   :  { %1873 = vmatmul.msk.bf16.gmra.mxu2 %vm107_vm0, %v2023_v14 }
  0x8e   :  { %549 = vmatpush.bf16.msra.mxu3 %v2515_v13 }
  0x91   :  { %540 = vmatmul.bf16.vlgmr.msrb.gmra.mxu3 %v2554_v33  ;;  %v141_v58 = vpop.f32.mrf.mxu0 }
  0x92   :  { %550 = vmatpush.bf16.msra.mxu3 %v2537_v23 }
  0x94   :  { %v190_v10 = vpop.f32.mrf.mxu1 }
  0x96   :  { %551 = vmatpush.bf16.msra.mxu3 %v2556_v34 }
  0x99   :  { %v143_v63 = vpop.f32.mrf.mxu0 }
  0x9a   :  { %552 = vmatpush.bf16.msra.mxu3 %v2575_v41 }
  0x9c   :  { %v192_v27 = vpop.f32.mrf.mxu1 }
  0x9e   :  { %553 = vmatpush.bf16.msra.mxu3 %v2589_v46 }
  0xa1   :  { %554 = vmatmul.bf16.vlgmr.msra.gmra.mxu3 %v2554_v33 }
  0xa2   :  { %677 = vmatpush.bf16.msrb.mxu3 %v2313_v6 }
  0xa6   :  { %678 = vmatpush.bf16.msrb.mxu3 %v2319_v8 }
  0xaa   :  { %679 = vmatpush.bf16.msrb.mxu3 %v2331_v12 }
  0xae   :  { %680 = vmatpush.bf16.msrb.mxu3 %v2340_v15 }
  0xb2   :  { %681 = vmatpush.bf16.msrb.mxu3 %v2352_v19 }
  0xb6   :  { %682 = vmatpush.bf16.msrb.mxu3 %v2361_v22 }
  0xba   :  { %683 = vmatpush.bf16.msrb.mxu3 %v2373_v26 }
  0xbe   :  { %684 = vmatpush.bf16.msrb.mxu3 %v2388_v31 }
  0xc2   :  { %852 = vmatpush.bf16.msra.mxu3 %v2390_v32 }
  0xc6   :  { %853 = vmatpush.bf16.msra.mxu3 %v2403_v36 }
  0xca   :  { %854 = vmatpush.bf16.msra.mxu3 %v2412_v39 }
  0xce   :  { %855 = vmatpush.bf16.msra.mxu3 %v2421_v42 }
  0xd2   :  { %856 = vmatpush.bf16.msra.mxu3 %v2430_v45 }
  0xd6   :  { %857 = vmatpush.bf16.msra.mxu3 %v2439_v48 }
  0xda   :  { %858 = vmatpush.bf16.msra.mxu3 %v2448_v51 }
  0xde   :  { %859 = vmatpush.bf16.msra.mxu3 %v2457_v54 }
 0x104   :  { %v527_v59 = vpop.f32.mrf.mxu3 }
 0x105   :  { %v566_v61 = vadd.f32 %v527_v59, %v141_v58  ;;  %v239_v59 = vpop.f32.mrf.mxu2 }
 0x107   :  { %v1970_v62 = vmul.f32 -1.442695, %v566_v61 }
 0x109   :  { %2102 = vpow2.f32 %v1970_v62 }
 0x10c   :  { %v529_v1 = vpop.f32.mrf.mxu3 }
 0x10d   :  { %v567_v2 = vadd.f32 %v529_v1, %v143_v63 }
 0x10f   :  { %v2103_v4 = vpop.eup %2102  ;;  %v1971_v5 = vmul.f32 -1.442695, %v567_v2 }
 0x110   :  { %v574_v9 = vadd.f32 1.0, %v2103_v4 }
 0x111   :  { %2104 = vpow2.f32 %v1971_v5 }
 0x112   :  { %2106 = vrcp.f32 %v574_v9  ;;  %v587_v49 = vand.u32 2147483648, %v574_v9  ;;  %vm581_vm2 = vweird.f32 %v574_v9  ;;  %v585_v53 = vand.u32 2147483647, %v574_v9 }
 0x114   :  { %v541_v11 = vpop.f32.mrf.mxu3  ;;  %v588_v60 = vor.u32 1.1754944e-38, %v587_v49  ;;  %vm586_vm5 = vcmp.eq.f32.partialorder %v585_v53, 8.507059e+37 }
 0x115   :  { %v606_v16 = vadd.f32 %v541_v11, %v190_v10 }
 0x117   :  { %v2105_v17 = vpop.eup %2104  ;;  %v1972_v18 = vmul.f32 -1.442695, %v606_v16 }
 0x118   :  { %v2107_v20 = vpop.eup %2106  ;;  %v575_v21 = vadd.f32 1.0, %v2105_v17 }
 0x119   :  { %2108 = vpow2.f32 %v1972_v18  ;;  %v577_v24 = vmul.f32 %v2107_v20, %v574_v9  ;;  %vm582_vm1 = vweird.f32 %v2107_v20 }
 0x11a   :  { %2110 = vrcp.f32 %v575_v21  ;;  %vm2694_vm3 = vmor %vm581_vm2, %vm582_vm1  ;;  %v602_v62 = vand.u32 2147483648, %v575_v21  ;;  %vm596_vm6 = vweird.f32 %v575_v21  ;;  %v600_v2 = vand.u32 2147483647, %v575_v21 }
 0x11b   :  { %v578_v25 = vsub.f32 1.0, %v577_v24 }
 0x11c   :  { %v543_v28 = vpop.f32.mrf.mxu3  ;;  %v603_v14 = vor.u32 1.1754944e-38, %v602_v62  ;;  %vm601_vm8 = vcmp.eq.f32.partialorder %v600_v2, 8.507059e+37 }
 0x11d   :  { %v607_v33 = vadd.f32 %v543_v28, %v192_v27  ;;  %v579_v35 = vmul.f32 %v2107_v20, %v578_v25 }
 0x11f   :  { %v2109_v37 = vpop.eup %2108  ;;  %v1973_v38 = vmul.f32 -1.442695, %v607_v33  ;;  %v580_v47 = vadd.f32 %v2107_v20, %v579_v35 }
 0x120   :  { %v2111_v40 = vpop.eup %2110  ;;  %v614_v43 = vadd.f32 1.0, %v2109_v37 }
 0x121   :  { %2112 = vpow2.f32 %v1973_v38  ;;  %v592_v44 = vmul.f32 %v2111_v40, %v575_v21  ;;  %v584_v57 = vsel %vm2694_vm3, %v2107_v20, %v580_v47  ;;  %vm597_vm4 = vweird.f32 %v2111_v40  ;;  %v363_v21 = vld [vmem:[%s3121_s1 + $0x20] sm:$0xff] }
 0x122   :  { %2114 = vrcp.f32 %v614_v43  ;;  %v589_v5 = vsel %vm586_vm5, %v588_v60, %v584_v57  ;;  %vm598_vm7 = vmor %vm596_vm6, %vm597_vm4  ;;  %v627_v16 = vand.u32 2147483648, %v614_v43  ;;  %v625_v20 = vand.u32 2147483647, %v614_v43  ;;  %827 = vperm.xlu2 %2101, %v363_v21   ;;  %v195_v21 = vpop.f32.mrf.mxu1 }
 0x123   :  { %v593_v50 = vsub.f32 1.0, %v592_v44  ;;  %vm621_vm10 = vweird.f32 %v614_v43 }
 0x124   :  { %v555_v52 = vpop.f32.mrf.mxu3  ;;  %v628_v35 = vor.u32 1.1754944e-38, %v627_v16  ;;  %vm626_vm12 = vcmp.eq.f32.partialorder %v625_v20, 8.507059e+37  ;;  %v364_v20 = vld [vmem:[%s3121_s1 + $0x28] sm:$0xff] }
 0x125   :  { %v594_v56 = vmul.f32 %v2111_v40, %v593_v50  ;;  %v646_v9 = vmul.f32 %v589_v5, %v555_v52 }
 0x127   :  { %v2113_v58 = vpop.eup %2112  ;;  %v595_v61 = vadd.f32 %v2111_v40, %v594_v56  ;;  %v648_v25 = vadd.f32 %v646_v9, %v239_v59  ;;  %v667_v56 = vpop.permute.xlu1 %666 }
 0x128   :  { %v2115_v63 = vpop.eup %2114  ;;  %v615_v1 = vadd.f32 1.0, %v2113_v58 }
 0x129   :  { %v617_v4 = vmul.f32 %v2115_v63, %v614_v43  ;;  %v599_v10 = vsel %vm598_vm7, %v2111_v40, %v595_v61  ;;  %vm622_vm9 = vweird.f32 %v2115_v63  ;;  %v241_v40 = vpop.f32.mrf.mxu2  ;;  %v2703_v43 = vpop.f32.mrf.mxu0 }
 0x12a   :  { %2116 = vrcp.f32 %v615_v1  ;;  %v604_v24 = vsel %vm601_vm8, %v603_v14, %v599_v10  ;;  %vm623_vm11 = vmor %vm621_vm10, %vm622_vm9  ;;  %v642_v50 = vand.u32 2147483648, %v615_v1  ;;  %v640_v55 = vand.u32 2147483647, %v615_v1  ;;  %832 = vperm.xlu2 %2101, %v364_v20  }
 0x12b   :  { %v618_v11 = vsub.f32 1.0, %v617_v4  ;;  %2118 = vtanh.f32 %v648_v25  ;;  %vm636_vm14 = vweird.f32 %v615_v1  ;;  %v370_v25 = vld [vmem:[%s3121_s1 + $0x58] sm:$0xff] }
 0x12c   :  { %v557_v17 = vpop.f32.mrf.mxu3  ;;  %v643_v59 = vor.u32 1.1754944e-38, %v642_v50  ;;  %vm641_vm0 = vcmp.eq.f32.partialorder %v640_v55, 8.507059e+37 }
 0x12d   :  { %v619_v18 = vmul.f32 %v2115_v63, %v618_v11  ;;  %v647_v27 = vmul.f32 %v604_v24, %v557_v17  ;;  %v367_v24 = vld [vmem:[%s3121_s1 + $0x40] sm:$0xff] }
 0x12f   :  { %v620_v28 = vadd.f32 %v2115_v63, %v619_v18  ;;  %v649_v47 = vadd.f32 %v647_v27, %v241_v40  ;;  %v672_v14 = vpop.permute.xlu1 %671 }
 0x130   :  { %v2117_v33 = vpop.eup %2116 }
 0x131   :  { %v632_v37 = vmul.f32 %v2117_v33, %v615_v1  ;;  %v624_v38 = vsel %vm623_vm11, %v2115_v63, %v620_v28  ;;  %vm637_vm13 = vweird.f32 %v2117_v33  ;;  %2120 = vtanh.f32 %v649_v47  ;;  %v2119_v58 = vpop.eup %2118  ;;  %v2707_v16 = vpop.f32.mrf.mxu0  ;;  %v373_v28 = vld [vmem:[%s3121_s1 + $0x70] sm:$0xff] }
 0x132   :  { %v629_v44 = vsel %vm626_vm12, %v628_v35, %v624_v38  ;;  %vm638_vm15 = vmor %vm636_vm14, %vm637_vm13  ;;  %1149 = vperm.xlu2 %2101, %v367_v24   ;;  %v197_v35 = vpop.f32.mrf.mxu1 }
 0x133   :  { %v633_v49 = vsub.f32 1.0, %v632_v37  ;;  %v652_v53 = vsub.f32 1.0, %v629_v44  ;;  %v656_v2 = vmul.f32 %v629_v44, %v2546_v29 }
 0x135   :  { %v634_v52 = vmul.f32 %v2117_v33, %v633_v49  ;;  %v654_v60 = vmul.f32 %v2119_v58, %v652_v53 }
 0x137   :  { %v635_v57 = vadd.f32 %v2117_v33, %v634_v52  ;;  %v2121_v4 = vpop.eup %2120  ;;  %v658_v10 = vadd.f32 %v656_v2, %v654_v60 }
 0x139   :  { %v639_v61 = vsel %vm638_vm15, %v2117_v33, %v635_v57  ;;  %v2709_v17 = vmul.f32 %v667_v56, %v658_v10 }
 0x13a   :  { %v644_v62 = vsel %vm641_vm0, %v643_v59, %v639_v61  ;;  %1315 = vperm.xlu2 %2101, %v370_v25   ;;  %v2762_v38 = vpop.f32.mrf.mxu1 }
 0x13b   :  { %v653_v63 = vsub.f32 1.0, %v644_v62  ;;  %v657_v9 = vmul.f32 %v644_v62, %v2548_v30  ;;  %v2724_v30 = vpop.f32.mrf.mxu0 }
 0x13d   :  { %v655_v5 = vmul.f32 %v2121_v4, %v653_v63 }
 0x13f   :  { %v659_v11 = vadd.f32 %v657_v9, %v655_v5 }
 0x141   :  { %v2054_v1 = vpack.c.bf16 %v659_v11, %v658_v10  ;;  %v2711_v18 = vmul.f32 %v672_v14, %v659_v11 }
 0x142   :  { %1632 = vperm.xlu2 %2101, %v373_v28   ;;  %v2766_v44 = vpop.f32.mrf.mxu1 }
 0x143   :  { %2055 = vst [vmem:[%s3126_s5] sm:$0xff] %v2054_v1   ;;  %v676_v29 = vpack.c.bf16 %v2711_v18, %v2709_v17  ;;  %v2740_v27 = vpop.f32.mrf.mxu0 }
 0x145   :  { %685 = vmatmul.bf16.vlgmr.msrb.gmra.mxu3 %v676_v29  ;;  %699 = vmatmul.bf16.vlgmr.msrb.gmra.mxu0 %v676_v29 }
 0x146   :  { %713 = vmatmul.bf16.vlgmr.msrb.gmra.mxu1 %v676_v29  ;;  %1027 = vmatpush.bf16.msrb.mxu3 %v2484_v0 }
 0x147   :  { %1160 = vmatpush.bf16.msrb.mxu0 %v2313_v6  ;;  %1174 = vmatpush.bf16.msrb.mxu1 %v2390_v32 }
 0x14a   :  { %1028 = vmatpush.bf16.msrb.mxu3 %v2494_v3  ;;  %v2770_v49 = vpop.f32.mrf.mxu1 }
 0x14b   :  { %1161 = vmatpush.bf16.msrb.mxu0 %v2319_v8  ;;  %1175 = vmatpush.bf16.msrb.mxu1 %v2403_v36  ;;  %v2752_v33 = vpop.f32.mrf.mxu0 }
 0x14e   :  { %1029 = vmatpush.bf16.msrb.mxu3 %v2505_v7 }
 0x14f   :  { %1162 = vmatpush.bf16.msrb.mxu0 %v2331_v12  ;;  %1176 = vmatpush.bf16.msrb.mxu1 %v2412_v39 }
 0x152   :  { %1030 = vmatpush.bf16.msrb.mxu3 %v2515_v13  ;;  %v2774_v52 = vpop.f32.mrf.mxu1 }
 0x153   :  { %1163 = vmatpush.bf16.msrb.mxu0 %v2340_v15  ;;  %1177 = vmatpush.bf16.msrb.mxu1 %v2421_v42  ;;  %v2760_v37 = vpop.f32.mrf.mxu0 }
 0x156   :  { %1031 = vmatpush.bf16.msrb.mxu3 %v2537_v23 }
 0x157   :  { %1164 = vmatpush.bf16.msrb.mxu0 %v2352_v19  ;;  %1178 = vmatpush.bf16.msrb.mxu1 %v2430_v45 }
 0x15a   :  { %1032 = vmatpush.bf16.msrb.mxu3 %v2556_v34  ;;  %v2778_v55 = vpop.f32.mrf.mxu1 }
 0x15b   :  { %1165 = vmatpush.bf16.msrb.mxu0 %v2361_v22  ;;  %1179 = vmatpush.bf16.msrb.mxu1 %v2439_v48  ;;  %v2764_v40 = vpop.f32.mrf.mxu0 }
 0x15e   :  { %1033 = vmatpush.bf16.msrb.mxu3 %v2575_v41 }
 0x15f   :  { %1166 = vmatpush.bf16.msrb.mxu0 %v2373_v26  ;;  %1180 = vmatpush.bf16.msrb.mxu1 %v2448_v51 }
 0x162   :  { %1034 = vmatpush.bf16.msrb.mxu3 %v2589_v46  ;;  %v2782_v57 = vpop.f32.mrf.mxu1 }
 0x163   :  { %1167 = vmatpush.bf16.msrb.mxu0 %v2388_v31  ;;  %1181 = vmatpush.bf16.msrb.mxu1 %v2457_v54  ;;  %v2768_v47 = vpop.f32.mrf.mxu0  ;;  %3134 = vst [vmem:[#allocation8_spill] sm:$0xff] %v2782_v57 }
 0x164   :  { %3130 = vst [vmem:[#allocation4_spill] sm:$0xff] %v2768_v47 }
 0x16a   :  { %v2786_v59 = vpop.f32.mrf.mxu1 }
 0x16b   :  { %v2772_v50 = vpop.f32.mrf.mxu0  ;;  %3136 = vst [vmem:[#allocation10_spill] sm:$0xff] %v2786_v59 }
 0x16c   :  { %3131 = vst [vmem:[#allocation5_spill] sm:$0xff] %v2772_v50 }
 0x172   :  { %v2790_v61 = vpop.f32.mrf.mxu1 }
 0x173   :  { %v2776_v53 = vpop.f32.mrf.mxu0  ;;  %3138 = vst [vmem:[#allocation12_spill] sm:$0xff] %v2790_v61 }
 0x174   :  { %3132 = vst [vmem:[#allocation6_spill] sm:$0xff] %v2776_v53  ;;  %v244_v53 = vpop.f32.mrf.mxu2 }
 0x17a   :  { %v2794_v63 = vpop.f32.mrf.mxu1 }
 0x17b   :  { %v2780_v56 = vpop.f32.mrf.mxu0  ;;  %3140 = vst [vmem:[#allocation14_spill] sm:$0xff] %v2794_v63 }
 0x17c   :  { %3133 = vst [vmem:[#allocation7_spill] sm:$0xff] %v2780_v56 }
 0x182   :  { %v2796_v9 = vpop.f32.mrf.mxu1 }
 0x183   :  { %v2784_v58 = vpop.f32.mrf.mxu0  ;;  %3141 = vst [vmem:[#allocation15_spill] sm:$0xff] %v2796_v9 }
 0x184   :  { %3135 = vst [vmem:[#allocation9_spill] sm:$0xff] %v2784_v58 }
 0x18a   :  { %v2799_v25 = vpop.f32.mrf.mxu1 }
 0x18b   :  { %v2788_v60 = vpop.f32.mrf.mxu0  ;;  %3142 = vst [vmem:[#allocation16_spill] sm:$0xff] %v2799_v25 }
 0x18c   :  { %3137 = vst [vmem:[#allocation11_spill] sm:$0xff] %v2788_v60 }
 0x193   :  { %v2792_v62 = vpop.f32.mrf.mxu0 }
 0x194   :  { %3139 = vst [vmem:[#allocation13_spill] sm:$0xff] %v2792_v62 }
 0x1c2   :  { %v700_v2 = vpop.f32.mrf.mxu0 }
 0x1c3   :  { %v766_v4 = vadd.f32 %v700_v2, %v195_v21 }
 0x1c5   :  { %v1976_v5 = vmul.f32 -1.442695, %v766_v4 }
 0x1c7   :  { %2122 = vpow2.f32 %v1976_v5 }
 0x1c8   :  { %v686_v10 = vpop.f32.mrf.mxu3 }
 0x1c9   :  { %v726_v11 = vadd.f32 %v686_v10, %v2703_v43 }
 0x1ca   :  { %v702_v14 = vpop.f32.mrf.mxu0 }
 0x1cb   :  { %v1974_v1 = vmul.f32 -1.442695, %v726_v11  ;;  %v767_v20 = vadd.f32 %v702_v14, %v197_v35  ;;  %v2810_v11 = vpop.f32.mrf.mxu1 }
 0x1cc   :  { %3143 = vst [vmem:[#allocation17_spill] sm:$0xff] %v2810_v11 }
 0x1cd   :  { %v2123_v29 = vpop.eup %2122  ;;  %2124 = vpow2.f32 %v1974_v1  ;;  %v1977_v24 = vmul.f32 -1.442695, %v767_v20 }
 0x1ce   :  { %v2801_v28 = vadd.f32 1.0, %v2123_v29 }
 0x1cf   :  { %2126 = vpow2.f32 %v1977_v24 }
 0x1d0   :  { %v688_v62 = vpop.f32.mrf.mxu3  ;;  %2128 = vrcp.f32 %v2801_v28  ;;  %vm781_vm8 = vweird.f32 %v2801_v28 }
 0x1d1   :  { %v727_v21 = vadd.f32 %v688_v62, %v2707_v16 }
 0x1d3   :  { %v2125_v2 = vpop.eup %2124  ;;  %v1975_v4 = vmul.f32 -1.442695, %v727_v21 }
 0x1d4   :  { %v734_v5 = vadd.f32 1.0, %v2125_v2 }
 0x1d5   :  { %v2127_v43 = vpop.eup %2126  ;;  %2130 = vpow2.f32 %v1975_v4 }
 0x1d6   :  { %2132 = vrcp.f32 %v734_v5  ;;  %v2805_v35 = vadd.f32 1.0, %v2127_v43  ;;  %v2808_v10 = vpop.eup %2128  ;;  %v747_v21 = vand.u32 2147483648, %v734_v5  ;;  %v745_v4 = vand.u32 2147483647, %v734_v5 }
 0x1d7   :  { %v777_v62 = vmul.f32 %v2808_v10, %v2801_v28  ;;  %vm741_vm2 = vweird.f32 %v734_v5  ;;  %vm782_vm6 = vweird.f32 %v2808_v10 }
 0x1d8   :  { %2134 = vrcp.f32 %v2805_v35  ;;  %v748_v9 = vor.u32 1.1754944e-38, %v747_v21  ;;  %vm746_vm4 = vcmp.eq.f32.partialorder %v745_v4, 8.507059e+37  ;;  %vm2825_vm10 = vmor %vm781_vm8, %vm782_vm6  ;;  %vm796_vm13 = vweird.f32 %v2805_v35 }
 0x1d9   :  { %v778_v43 = vsub.f32 1.0, %v777_v62 }
 0x1db   :  { %v2131_v14 = vpop.eup %2130  ;;  %v779_v56 = vmul.f32 %v2808_v10, %v778_v43  ;;  %v828_v43 = vpop.permute.xlu2 %827 }
 0x1dc   :  { %v2133_v1 = vpop.eup %2132  ;;  %v735_v20 = vadd.f32 1.0, %v2131_v14  ;;  %v714_v14 = vpop.f32.mrf.mxu1 }
 0x1dd   :  { %v737_v16 = vmul.f32 %v2133_v1, %v734_v5  ;;  %vm742_vm1 = vweird.f32 %v2133_v1  ;;  %v780_v47 = vadd.f32 %v2808_v10, %v779_v56 }
 0x1de   :  { %2136 = vrcp.f32 %v735_v20  ;;  %v2814_v29 = vpop.eup %2134  ;;  %vm743_vm3 = vmor %vm741_vm2, %vm742_vm1  ;;  %v762_v62 = vand.u32 2147483648, %v735_v20  ;;  %vm756_vm7 = vweird.f32 %v735_v20 }
 0x1df   :  { %v738_v24 = vsub.f32 1.0, %v737_v16  ;;  %v792_v25 = vmul.f32 %v2814_v29, %v2805_v35  ;;  %vm797_vm12 = vweird.f32 %v2814_v29 }
 0x1e0   :  { %vm798_vm15 = vmor %vm796_vm13, %vm797_vm12 }
 0x1e1   :  { %v739_v2 = vmul.f32 %v2133_v1, %v738_v24  ;;  %v793_v16 = vsub.f32 1.0, %v792_v25  ;;  %v802_v25 = vand.u32 2147483648, %v2805_v35 }
 0x1e3   :  { %v740_v11 = vadd.f32 %v2133_v1, %v739_v2  ;;  %v760_v2 = vand.u32 2147483647, %v735_v20  ;;  %v794_v5 = vmul.f32 %v2814_v29, %v793_v16 }
 0x1e4   :  { %v2137_v60 = vpop.eup %2136  ;;  %v716_v56 = vpop.f32.mrf.mxu1 }
 0x1e5   :  { %v744_v58 = vsel %vm743_vm3, %v2133_v1, %v740_v11  ;;  %v752_v63 = vmul.f32 %v2137_v60, %v735_v20  ;;  %vm757_vm5 = vweird.f32 %v2137_v60  ;;  %v787_v11 = vand.u32 2147483648, %v2801_v28 }
 0x1e6   :  { %v749_v24 = vsel %vm746_vm4, %v748_v9, %v744_v58  ;;  %v785_v58 = vand.u32 2147483647, %v2801_v28  ;;  %vm758_vm9 = vmor %vm756_vm7, %vm757_vm5  ;;  %vm761_vm11 = vcmp.eq.f32.partialorder %v760_v2, 8.507059e+37  ;;  %v795_v9 = vadd.f32 %v2814_v29, %v794_v5 }
 0x1e7   :  { %v806_v61 = vmul.f32 %v749_v24, %v714_v14  ;;  %v753_v50 = vsub.f32 1.0, %v752_v63  ;;  %v763_v63 = vor.u32 1.1754944e-38, %v762_v62  ;;  %v788_v28 = vor.u32 1.1754944e-38, %v787_v11 }
 0x1e8   :  { %vm786_vm14 = vcmp.eq.f32.partialorder %v785_v58, 8.507059e+37  ;;  %v803_v14 = vor.u32 1.1754944e-38, %v802_v25 }
 0x1e9   :  { %v808_v59 = vadd.f32 %v806_v61, %v244_v53  ;;  %v754_v57 = vmul.f32 %v2137_v60, %v753_v50  ;;  %v784_v61 = vsel %vm2825_vm10, %v2808_v10, %v780_v47  ;;  %v799_v47 = vsel %vm798_vm15, %v2814_v29, %v795_v9  ;;  %v833_v50 = vpop.permute.xlu2 %832 }
 0x1ea   :  { %v789_v21 = vsel %vm786_vm14, %v788_v28, %v784_v61 }
 0x1eb   :  { %v755_v1 = vadd.f32 %v2137_v60, %v754_v57  ;;  %2138 = vtanh.f32 %v808_v59  ;;  %v246_v59 = vpop.f32.mrf.mxu2  ;;  %v812_v16 = vsub.f32 1.0, %v789_v21  ;;  %v816_v5 = vmul.f32 %v789_v21, %v2709_v17 }
 0x1ed   :  { %v759_v53 = vsel %vm758_vm9, %v2137_v60, %v755_v1  ;;  %v800_v60 = vand.u32 2147483647, %v2805_v35 }
 0x1ee   :  { %v764_v57 = vsel %vm761_vm11, %v763_v63, %v759_v53 }
 0x1ef   :  { %v807_v20 = vmul.f32 %v764_v57, %v716_v56  ;;  %vm801_vm0 = vcmp.eq.f32.partialorder %v800_v60, 8.507059e+37 }
 0x1f0   :  { %v804_v24 = vsel %vm801_vm0, %v803_v14, %v799_v47 }
 0x1f1   :  { %v809_v4 = vadd.f32 %v807_v20, %v246_v59  ;;  %v2139_v10 = vpop.eup %2138  ;;  %v813_v2 = vsub.f32 1.0, %v804_v24  ;;  %v817_v35 = vmul.f32 %v804_v24, %v2711_v18 }
 0x1f2   :  { %v814_v62 = vmul.f32 %v2139_v10, %v812_v16 }
 0x1f3   :  { %2140 = vtanh.f32 %v809_v4  ;;  %v2858_v17 = vpop.f32.mrf.mxu2 }
 0x1f4   :  { %v818_v58 = vadd.f32 %v816_v5, %v814_v62 }
 0x1f6   :  { %v2840_v29 = vmul.f32 %v828_v43, %v818_v58 }
 0x1f9   :  { %v2141_v11 = vpop.eup %2140 }
 0x1fa   :  { %v815_v1 = vmul.f32 %v2141_v11, %v813_v2 }
 0x1fb   :  { %v2869_v18 = vpop.f32.mrf.mxu2 }
 0x1fc   :  { %v819_v63 = vadd.f32 %v817_v35, %v815_v1 }
 0x1fe   :  { %v2059_v53 = vpack.c.bf16 %v819_v63, %v818_v58  ;;  %v2842_v56 = vmul.f32 %v833_v50, %v819_v63 }
 0x200   :  { %2091 = vst [vmem:[%s3126_s5 + $0x8] sm:$0xff] %v2059_v53   ;;  %v837_v61 = vpack.c.bf16 %v2842_v56, %v2840_v29 }
 0x202   :  { %846 = vmatmul.bf16.vlgmr.msrb.gmra.mxu2 %v837_v61  ;;  %860 = vmatmul.bf16.vlgmr.msra.gmra.mxu3 %v837_v61 }
 0x203   :  { %874 = vmatmul.bf16.vlgmr.msra.gmra.mxu0 %v837_v61  ;;  %1188 = vmatpush.bf16.msrb.mxu2 %v2484_v0  ;;  %v2877_v57 = vpop.f32.mrf.mxu2 }
 0x204   :  { %1321 = vmatpush.bf16.msra.mxu3 %v2313_v6  ;;  %1335 = vmatpush.bf16.msra.mxu0 %v2390_v32 }
 0x207   :  { %1189 = vmatpush.bf16.msrb.mxu2 %v2494_v3 }
 0x208   :  { %1322 = vmatpush.bf16.msra.mxu3 %v2319_v8  ;;  %1336 = vmatpush.bf16.msra.mxu0 %v2403_v36 }
 0x20b   :  { %1190 = vmatpush.bf16.msrb.mxu2 %v2505_v7  ;;  %v2879_v9 = vpop.f32.mrf.mxu2 }
 0x20c   :  { %1323 = vmatpush.bf16.msra.mxu3 %v2331_v12  ;;  %1337 = vmatpush.bf16.msra.mxu0 %v2412_v39 }
 0x20f   :  { %1191 = vmatpush.bf16.msrb.mxu2 %v2515_v13 }
 0x210   :  { %1324 = vmatpush.bf16.msra.mxu3 %v2340_v15  ;;  %1338 = vmatpush.bf16.msra.mxu0 %v2421_v42 }
 0x213   :  { %1192 = vmatpush.bf16.msrb.mxu2 %v2537_v23  ;;  %v2881_v25 = vpop.f32.mrf.mxu2 }
 0x214   :  { %1325 = vmatpush.bf16.msra.mxu3 %v2352_v19  ;;  %1339 = vmatpush.bf16.msra.mxu0 %v2430_v45 }
 0x217   :  { %1193 = vmatpush.bf16.msrb.mxu2 %v2556_v34 }
 0x218   :  { %1326 = vmatpush.bf16.msra.mxu3 %v2361_v22  ;;  %1340 = vmatpush.bf16.msra.mxu0 %v2439_v48 }
 0x21b   :  { %1194 = vmatpush.bf16.msrb.mxu2 %v2575_v41  ;;  %v2883_v28 = vpop.f32.mrf.mxu2 }
 0x21c   :  { %1327 = vmatpush.bf16.msra.mxu3 %v2373_v26  ;;  %1341 = vmatpush.bf16.msra.mxu0 %v2448_v51 }
 0x21f   :  { %1195 = vmatpush.bf16.msrb.mxu2 %v2589_v46 }
 0x220   :  { %1328 = vmatpush.bf16.msra.mxu3 %v2388_v31  ;;  %1342 = vmatpush.bf16.msra.mxu0 %v2457_v54 }
 0x223   :  { %v2885_v20 = vpop.f32.mrf.mxu2 }
 0x224   :  { %3146 = vst [vmem:[#allocation18_spill] sm:$0xff] %v2885_v20 }
 0x22b   :  { %v2887_v59 = vpop.f32.mrf.mxu2 }
 0x22c   :  { %3147 = vst [vmem:[#allocation19_spill] sm:$0xff] %v2887_v59 }
 0x233   :  { %v2889_v60 = vpop.f32.mrf.mxu2 }
 0x234   :  { %3148 = vst [vmem:[#allocation20_spill] sm:$0xff] %v2889_v60 }
 0x23b   :  { %v2891_v21 = vpop.f32.mrf.mxu2 }
 0x23c   :  { %3149 = vst [vmem:[#allocation21_spill] sm:$0xff] %v2891_v21 }
 0x243   :  { %v2893_v4 = vpop.f32.mrf.mxu2 }
 0x244   :  { %3150 = vst [vmem:[#allocation22_spill] sm:$0xff] %v2893_v4 }
 0x24b   :  { %v2895_v47 = vpop.f32.mrf.mxu2 }
 0x24c   :  { %3151 = vst [vmem:[#allocation23_spill] sm:$0xff] %v2895_v47 }
 0x285   :  { %v847_v10 = vpop.f32.mrf.mxu2  ;;  %v861_v43 = vpop.f32.mrf.mxu3 }
 0x286   :  { %v887_v14 = vadd.f32 %v847_v10, %v2724_v30  ;;  %v927_v16 = vadd.f32 %v861_v43, %v2762_v38 }
 0x288   :  { %v1980_v24 = vmul.f32 -1.442695, %v887_v14  ;;  %v1982_v62 = vmul.f32 -1.442695, %v927_v16 }
 0x28a   :  { %2142 = vpow2.f32 %v1980_v24 }
 0x28b   :  { %2144 = vpow2.f32 %v1982_v62 }
 0x28d   :  { %v849_v2 = vpop.f32.mrf.mxu2  ;;  %v863_v5 = vpop.f32.mrf.mxu3 }
 0x28e   :  { %v888_v11 = vadd.f32 %v849_v2, %v2740_v27  ;;  %v928_v1 = vadd.f32 %v863_v5, %v2766_v44 }
 0x290   :  { %v2143_v35 = vpop.eup %2142  ;;  %v1981_v58 = vmul.f32 -1.442695, %v888_v11  ;;  %v1983_v53 = vmul.f32 -1.442695, %v928_v1 }
 0x291   :  { %v2145_v63 = vpop.eup %2144  ;;  %v895_v50 = vadd.f32 1.0, %v2143_v35 }
 0x292   :  { %v2901_v61 = vadd.f32 1.0, %v2145_v63  ;;  %2146 = vpow2.f32 %v1981_v58  ;;  %v875_v58 = vpop.f32.mrf.mxu0 }
 0x293   :  { %2148 = vrcp.f32 %v895_v50  ;;  %v908_v62 = vand.u32 2147483648, %v895_v50  ;;  %v906_v5 = vand.u32 2147483647, %v895_v50  ;;  %vm902_vm2 = vweird.f32 %v895_v50 }
 0x294   :  { %2150 = vrcp.f32 %v2901_v61  ;;  %vm942_vm8 = vweird.f32 %v2901_v61 }
 0x295   :  { %2152 = vpow2.f32 %v1983_v53  ;;  %v909_v63 = vor.u32 1.1754944e-38, %v908_v62  ;;  %vm907_vm4 = vcmp.eq.f32.partialorder %v906_v5, 8.507059e+37  ;;  %v948_v62 = vand.u32 2147483648, %v2901_v61 }
 0x296   :  { %v946_v5 = vand.u32 2147483647, %v2901_v61 }
 0x298   :  { %v2147_v30 = vpop.eup %2146  ;;  %vm947_vm13 = vcmp.eq.f32.partialorder %v946_v5, 8.507059e+37 }
 0x299   :  { %v2149_v38 = vpop.eup %2148  ;;  %v896_v10 = vadd.f32 1.0, %v2147_v30 }
 0x29a   :  { %v2151_v43 = vpop.eup %2150  ;;  %v898_v14 = vmul.f32 %v2149_v38, %v895_v50  ;;  %vm903_vm1 = vweird.f32 %v2149_v38 }
 0x29b   :  { %v2153_v27 = vpop.eup %2152  ;;  %v938_v44 = vmul.f32 %v2151_v43, %v2901_v61  ;;  %2154 = vrcp.f32 %v896_v10  ;;  %vm904_vm3 = vmor %vm902_vm2, %vm903_vm1  ;;  %v923_v60 = vand.u32 2147483648, %v896_v10  ;;  %v921_v20 = vand.u32 2147483647, %v896_v10 }
 0x29c   :  { %v899_v16 = vsub.f32 1.0, %v898_v14  ;;  %v936_v24 = vadd.f32 1.0, %v2153_v27  ;;  %vm943_vm6 = vweird.f32 %v2151_v43  ;;  %vm917_vm7 = vweird.f32 %v896_v10 }
 0x29d   :  { %v939_v11 = vsub.f32 1.0, %v938_v44  ;;  %vm2909_vm10 = vmor %vm942_vm8, %vm943_vm6  ;;  %vm922_vm11 = vcmp.eq.f32.partialorder %v921_v20, 8.507059e+37 }
 0x29e   :  { %v900_v2 = vmul.f32 %v2149_v38, %v899_v16  ;;  %2156 = vrcp.f32 %v936_v24  ;;  %v963_v61 = vand.u32 2147483648, %v936_v24  ;;  %vm957_vm14 = vweird.f32 %v936_v24 }
 0x29f   :  { %v940_v4 = vmul.f32 %v2151_v43, %v939_v11 }
 0x2a0   :  { %v901_v1 = vadd.f32 %v2149_v38, %v900_v2 }
 0x2a1   :  { %v2155_v35 = vpop.eup %2154  ;;  %v941_v50 = vadd.f32 %v2151_v43, %v940_v4 }
 0x2a2   :  { %v905_v53 = vsel %vm904_vm3, %v2149_v38, %v901_v1  ;;  %v913_v30 = vmul.f32 %v2155_v35, %v896_v10  ;;  %vm918_vm5 = vweird.f32 %v2155_v35  ;;  %v949_v10 = vor.u32 1.1754944e-38, %v948_v62  ;;  %v994_v1 = vpop.permute.xlu1 %993 }
 0x2a3   :  { %v910_v47 = vsel %vm907_vm4, %v909_v63, %v905_v53  ;;  %vm919_vm9 = vmor %vm917_vm7, %vm918_vm5 }
 0x2a4   :  { %v2157_v21 = vpop.eup %2156  ;;  %v967_v14 = vmul.f32 %v910_v47, %v875_v58  ;;  %v914_v27 = vsub.f32 1.0, %v913_v30  ;;  %v924_v47 = vor.u32 1.1754944e-38, %v923_v60  ;;  %v961_v60 = vand.u32 2147483647, %v936_v24 }
 0x2a5   :  { %v953_v16 = vmul.f32 %v2157_v21, %v936_v24  ;;  %vm958_vm12 = vweird.f32 %v2157_v21 }
 0x2a6   :  { %v915_v59 = vmul.f32 %v2155_v35, %v914_v27  ;;  %v969_v44 = vadd.f32 %v967_v14, %v2858_v17  ;;  %v877_v17 = vpop.f32.mrf.mxu0  ;;  %vm959_vm15 = vmor %vm957_vm14, %vm958_vm12  ;;  %v964_v27 = vor.u32 1.1754944e-38, %v963_v61  ;;  %vm962_vm0 = vcmp.eq.f32.partialorder %v961_v60, 8.507059e+37 }
 0x2a7   :  { %v954_v2 = vsub.f32 1.0, %v953_v16 }
 0x2a8   :  { %v916_v38 = vadd.f32 %v2155_v35, %v915_v59  ;;  %2158 = vtanh.f32 %v969_v44  ;;  %v945_v59 = vsel %vm2909_vm10, %v2151_v43, %v941_v50 }
 0x2a9   :  { %v955_v11 = vmul.f32 %v2157_v21, %v954_v2  ;;  %v950_v30 = vsel %vm947_vm13, %v949_v10, %v945_v59 }
 0x2aa   :  { %v920_v58 = vsel %vm919_vm9, %v2155_v35, %v916_v38  ;;  %v973_v16 = vsub.f32 1.0, %v950_v30  ;;  %v977_v43 = vmul.f32 %v950_v30, %v2840_v29 }
 0x2ab   :  { %v925_v4 = vsel %vm922_vm11, %v924_v47, %v920_v58  ;;  %v956_v63 = vadd.f32 %v2157_v21, %v955_v11  ;;  %v989_v11 = vpop.permute.xlu0 %988 }
 0x2ac   :  { %v968_v53 = vmul.f32 %v925_v4, %v877_v17 }
 0x2ad   :  { %v960_v35 = vsel %vm959_vm15, %v2157_v21, %v956_v63 }
 0x2ae   :  { %v970_v14 = vadd.f32 %v968_v53, %v2869_v18  ;;  %v2159_v20 = vpop.eup %2158  ;;  %v965_v44 = vsel %vm962_vm0, %v964_v27, %v960_v35 }
 0x2af   :  { %v975_v2 = vmul.f32 %v2159_v20, %v973_v16  ;;  %v974_v38 = vsub.f32 1.0, %v965_v44  ;;  %v978_v5 = vmul.f32 %v965_v44, %v2842_v56 }
 0x2b0   :  { %2160 = vtanh.f32 %v970_v14 }
 0x2b1   :  { %v979_v24 = vadd.f32 %v977_v43, %v975_v2 }
 0x2b3   :  { %v2918_v21 = vmul.f32 %v989_v11, %v979_v24 }
 0x2b6   :  { %v2161_v50 = vpop.eup %2160 }
 0x2b7   :  { %v976_v62 = vmul.f32 %v2161_v50, %v974_v38 }
 0x2b9   :  { %v980_v47 = vadd.f32 %v978_v5, %v976_v62 }
 0x2bb   :  { %v2064_v18 = vpack.c.bf16 %v980_v47, %v979_v24  ;;  %v2920_v58 = vmul.f32 %v994_v1, %v980_v47 }
 0x2bd   :  { %2092 = vst [vmem:[%s3126_s5 + $0x10] sm:$0xff] %v2064_v18   ;;  %v998_v29 = vpack.c.bf16 %v2920_v58, %v2918_v21 }
 0x2bf   :  { %1007 = vmatmul.bf16.vlgmr.msra.gmra.mxu1 %v998_v29  ;;  %1021 = vmatmul.bf16.vlgmr.msra.gmra.mxu2 %v998_v29 }
 0x2c0   :  { %1035 = vmatmul.bf16.vlgmr.msrb.gmra.mxu3 %v998_v29  ;;  %1349 = vmatpush.bf16.msra.mxu1 %v2484_v0 }
 0x2c1   :  { %1482 = vmatpush.bf16.msra.mxu2 %v2313_v6  ;;  %1496 = vmatpush.bf16.msrb.mxu3 %v2390_v32 }
 0x2c4   :  { %1350 = vmatpush.bf16.msra.mxu1 %v2494_v3 }
 0x2c5   :  { %1483 = vmatpush.bf16.msra.mxu2 %v2319_v8  ;;  %1497 = vmatpush.bf16.msrb.mxu3 %v2403_v36 }
 0x2c8   :  { %1351 = vmatpush.bf16.msra.mxu1 %v2505_v7 }
 0x2c9   :  { %1484 = vmatpush.bf16.msra.mxu2 %v2331_v12  ;;  %1498 = vmatpush.bf16.msrb.mxu3 %v2412_v39 }
 0x2cc   :  { %1352 = vmatpush.bf16.msra.mxu1 %v2515_v13 }
 0x2cd   :  { %1485 = vmatpush.bf16.msra.mxu2 %v2340_v15  ;;  %1499 = vmatpush.bf16.msrb.mxu3 %v2421_v42 }
 0x2d0   :  { %1353 = vmatpush.bf16.msra.mxu1 %v2537_v23 }
 0x2d1   :  { %1486 = vmatpush.bf16.msra.mxu2 %v2352_v19  ;;  %1500 = vmatpush.bf16.msrb.mxu3 %v2430_v45 }
 0x2d4   :  { %1354 = vmatpush.bf16.msra.mxu1 %v2556_v34 }
 0x2d5   :  { %1487 = vmatpush.bf16.msra.mxu2 %v2361_v22  ;;  %1501 = vmatpush.bf16.msrb.mxu3 %v2439_v48 }
 0x2d8   :  { %1355 = vmatpush.bf16.msra.mxu1 %v2575_v41 }
 0x2d9   :  { %1488 = vmatpush.bf16.msra.mxu2 %v2373_v26  ;;  %1502 = vmatpush.bf16.msrb.mxu3 %v2448_v51 }
 0x2dc   :  { %1356 = vmatpush.bf16.msra.mxu1 %v2589_v46 }
 0x2dd   :  { %1489 = vmatpush.bf16.msra.mxu2 %v2388_v31  ;;  %1503 = vmatpush.bf16.msrb.mxu3 %v2457_v54 }
 0x33c   :  { %v1008_v56 = vpop.f32.mrf.mxu1 }
 0x33d   :  { %v1048_v17 = vadd.f32 %v1008_v56, %v2752_v33 }
 0x33f   :  { %v1986_v4 = vmul.f32 -1.442695, %v1048_v17 }
 0x341   :  { %2162 = vpow2.f32 %v1986_v4 }
 0x342   :  { %v1022_v63 = vpop.f32.mrf.mxu2 }
 0x343   :  { %v1088_v59 = vadd.f32 %v1022_v63, %v2770_v49  ;;  %v1036_v56 = vpop.f32.mrf.mxu3 }
 0x344   :  { %v1010_v10 = vpop.f32.mrf.mxu1 }
 0x345   :  { %v1988_v53 = vmul.f32 -1.442695, %v1088_v59  ;;  %v1049_v61 = vadd.f32 %v1010_v10, %v2760_v37 }
 0x347   :  { %v2163_v60 = vpop.eup %2162  ;;  %2164 = vpow2.f32 %v1988_v53  ;;  %v1987_v30 = vmul.f32 -1.442695, %v1049_v61 }
 0x348   :  { %v1056_v14 = vadd.f32 1.0, %v2163_v60 }
 0x349   :  { %2166 = vpow2.f32 %v1987_v30 }
 0x34a   :  { %2168 = vrcp.f32 %v1056_v14  ;;  %v1024_v35 = vpop.f32.mrf.mxu2  ;;  %v1069_v37 = vand.u32 2147483648, %v1056_v14  ;;  %v1067_v5 = vand.u32 2147483647, %v1056_v14  ;;  %vm1063_vm2 = vweird.f32 %v1056_v14 }
 0x34b   :  { %v1089_v20 = vadd.f32 %v1024_v35, %v2774_v52 }
 0x34c   :  { %v1070_v1 = vor.u32 1.1754944e-38, %v1069_v37  ;;  %vm1068_vm4 = vcmp.eq.f32.partialorder %v1067_v5, 8.507059e+37  ;;  %v1038_v5 = vpop.f32.mrf.mxu3 }
 0x34d   :  { %v2165_v27 = vpop.eup %2164  ;;  %v1989_v33 = vmul.f32 -1.442695, %v1089_v20 }
 0x34e   :  { %v1096_v16 = vadd.f32 1.0, %v2165_v27 }
 0x34f   :  { %v2167_v44 = vpop.eup %2166  ;;  %2170 = vpow2.f32 %v1989_v33 }
 0x350   :  { %v2169_v2 = vpop.eup %2168  ;;  %2172 = vrcp.f32 %v1096_v16  ;;  %v1057_v38 = vadd.f32 1.0, %v2167_v44  ;;  %v1109_v33 = vand.u32 2147483648, %v1096_v16  ;;  %vm1103_vm8 = vweird.f32 %v1096_v16 }
 0x351   :  { %v1059_v49 = vmul.f32 %v2169_v2, %v1056_v14  ;;  %vm1064_vm1 = vweird.f32 %v2169_v2 }
 0x352   :  { %2174 = vrcp.f32 %v1057_v38  ;;  %vm1065_vm3 = vmor %vm1063_vm2, %vm1064_vm1  ;;  %v1084_v61 = vand.u32 2147483648, %v1057_v38  ;;  %v1082_v14 = vand.u32 2147483647, %v1057_v38  ;;  %vm1078_vm7 = vweird.f32 %v1057_v38 }
 0x353   :  { %v1060_v43 = vsub.f32 1.0, %v1059_v49 }
 0x354   :  { %vm1083_vm11 = vcmp.eq.f32.partialorder %v1082_v14, 8.507059e+37 }
 0x355   :  { %v2171_v50 = vpop.eup %2170  ;;  %v1061_v62 = vmul.f32 %v2169_v2, %v1060_v43  ;;  %v1085_v43 = vor.u32 1.1754944e-38, %v1084_v61 }
 0x356   :  { %v2173_v24 = vpop.eup %2172  ;;  %v1097_v47 = vadd.f32 1.0, %v2171_v50 }
 0x357   :  { %v1099_v11 = vmul.f32 %v2173_v24, %v1096_v16  ;;  %v1062_v52 = vadd.f32 %v2169_v2, %v1061_v62  ;;  %vm1104_vm6 = vweird.f32 %v2173_v24 }
 0x358   :  { %2176 = vrcp.f32 %v1097_v47  ;;  %v2175_v18 = vpop.eup %2174  ;;  %vm2956_vm10 = vmor %vm1103_vm8, %vm1104_vm6  ;;  %vm1118_vm14 = vweird.f32 %v1097_v47 }
 0x359   :  { %v1100_v29 = vsub.f32 1.0, %v1099_v11  ;;  %v1066_v17 = vsel %vm1065_vm3, %v2169_v2, %v1062_v52  ;;  %v1074_v63 = vmul.f32 %v2175_v18, %v1057_v38  ;;  %vm1079_vm5 = vweird.f32 %v2175_v18 }
 0x35a   :  { %v1071_v4 = vsel %vm1068_vm4, %v1070_v1, %v1066_v17  ;;  %v1107_v2 = vand.u32 2147483647, %v1096_v16  ;;  %vm1080_vm9 = vmor %vm1078_vm7, %vm1079_vm5  ;;  %v1110_v38 = vor.u32 1.1754944e-38, %v1109_v33  ;;  %v1124_v52 = vand.u32 2147483648, %v1097_v47  ;;  %v1150_v33 = vpop.permute.xlu2 %1149 }
 0x35b   :  { %v1101_v59 = vmul.f32 %v2173_v24, %v1100_v29  ;;  %v1128_v10 = vmul.f32 %v1071_v4, %v1036_v56  ;;  %v1075_v53 = vsub.f32 1.0, %v1074_v63  ;;  %v1122_v29 = vand.u32 2147483647, %v1097_v47 }
 0x35c   :  { %vm1108_vm13 = vcmp.eq.f32.partialorder %v1107_v2, 8.507059e+37  ;;  %v1125_v63 = vor.u32 1.1754944e-38, %v1124_v52 }
 0x35d   :  { %v1130_v30 = vadd.f32 %v1128_v10, %v2877_v57  ;;  %v1076_v35 = vmul.f32 %v2175_v18, %v1075_v53  ;;  %v1102_v20 = vadd.f32 %v2173_v24, %v1101_v59  ;;  %vm1123_vm0 = vcmp.eq.f32.partialorder %v1122_v29, 8.507059e+37 }
 0x35e   :  { %v2177_v60 = vpop.eup %2176 }
 0x35f   :  { %v1114_v27 = vmul.f32 %v2177_v60, %v1097_v47  ;;  %v1077_v44 = vadd.f32 %v2175_v18, %v1076_v35  ;;  %2178 = vtanh.f32 %v1130_v30  ;;  %v1106_v50 = vsel %vm2956_vm10, %v2173_v24, %v1102_v20 }
 0x360   :  { %vm1119_vm12 = vweird.f32 %v2177_v60  ;;  %v1111_v56 = vsel %vm1108_vm13, %v1110_v38, %v1106_v50 }
 0x361   :  { %v1115_v49 = vsub.f32 1.0, %v1114_v27  ;;  %v1081_v57 = vsel %vm1080_vm9, %v2175_v18, %v1077_v44  ;;  %vm1120_vm15 = vmor %vm1118_vm14, %vm1119_vm12  ;;  %v1134_v24 = vsub.f32 1.0, %v1111_v56  ;;  %v1138_v61 = vmul.f32 %v1111_v56, %v2918_v21  ;;  %v1155_v27 = vpop.permute.xlu0 %1154 }
 0x362   :  { %v1086_v11 = vsel %vm1083_vm11, %v1085_v43, %v1081_v57 }
 0x363   :  { %v1116_v62 = vmul.f32 %v2177_v60, %v1115_v49  ;;  %v1129_v16 = vmul.f32 %v1086_v11, %v1038_v5 }
 0x365   :  { %v1117_v1 = vadd.f32 %v2177_v60, %v1116_v62  ;;  %v1131_v17 = vadd.f32 %v1129_v16, %v2879_v9  ;;  %v2179_v4 = vpop.eup %2178 }
 0x366   :  { %v1136_v10 = vmul.f32 %v2179_v4, %v1134_v24 }
 0x367   :  { %v1121_v18 = vsel %vm1120_vm15, %v2177_v60, %v1117_v1  ;;  %2180 = vtanh.f32 %v1131_v17 }
 0x368   :  { %v1126_v59 = vsel %vm1123_vm0, %v1125_v63, %v1121_v18  ;;  %v1140_v47 = vadd.f32 %v1138_v61, %v1136_v10 }
 0x369   :  { %v1135_v53 = vsub.f32 1.0, %v1126_v59  ;;  %v1139_v14 = vmul.f32 %v1126_v59, %v2920_v58 }
 0x36a   :  { %v2965_v60 = vmul.f32 %v1150_v33, %v1140_v47 }
 0x36d   :  { %v2181_v30 = vpop.eup %2180 }
 0x36e   :  { %v1137_v35 = vmul.f32 %v2181_v30, %v1135_v53 }
 0x370   :  { %v1141_v20 = vadd.f32 %v1139_v14, %v1137_v35 }
 0x372   :  { %v2069_v9 = vpack.c.bf16 %v1141_v20, %v1140_v47  ;;  %v2967_v44 = vmul.f32 %v1155_v27, %v1141_v20 }
 0x374   :  { %2093 = vst [vmem:[%s3126_s5 + $0x18] sm:$0xff] %v2069_v9   ;;  %v1159_v21 = vpack.c.bf16 %v2967_v44, %v2965_v60 }
 0x376   :  { %1168 = vmatmul.bf16.vlgmr.msrb.gmra.mxu0 %v1159_v21  ;;  %1182 = vmatmul.bf16.vlgmr.msrb.gmra.mxu1 %v1159_v21 }
 0x377   :  { %1196 = vmatmul.bf16.vlgmr.msrb.gmra.mxu2 %v1159_v21  ;;  %1510 = vmatpush.bf16.msrb.mxu0 %v2484_v0 }
 0x378   :  { %1643 = vmatpush.bf16.msrb.mxu1 %v2313_v6  ;;  %1657 = vmatpush.bf16.msrb.mxu2 %v2390_v32 }
 0x37b   :  { %1511 = vmatpush.bf16.msrb.mxu0 %v2494_v3 }
 0x37c   :  { %1644 = vmatpush.bf16.msrb.mxu1 %v2319_v8  ;;  %1658 = vmatpush.bf16.msrb.mxu2 %v2403_v36  ;;  %v3156_v36 = vld [vmem:[#allocation4_spill] sm:$0xff] }
 0x37f   :  { %1512 = vmatpush.bf16.msrb.mxu0 %v2505_v7 }
 0x380   :  { %1645 = vmatpush.bf16.msrb.mxu1 %v2331_v12  ;;  %1659 = vmatpush.bf16.msrb.mxu2 %v2412_v39 }
 0x383   :  { %1513 = vmatpush.bf16.msrb.mxu0 %v2515_v13 }
 0x384   :  { %1646 = vmatpush.bf16.msrb.mxu1 %v2340_v15  ;;  %1660 = vmatpush.bf16.msrb.mxu2 %v2421_v42  ;;  %v3157_v42 = vld [vmem:[#allocation8_spill] sm:$0xff] }
 0x387   :  { %1514 = vmatpush.bf16.msrb.mxu0 %v2537_v23 }
 0x388   :  { %1647 = vmatpush.bf16.msrb.mxu1 %v2352_v19  ;;  %1661 = vmatpush.bf16.msrb.mxu2 %v2430_v45 }
 0x38b   :  { %1515 = vmatpush.bf16.msrb.mxu0 %v2556_v34 }
 0x38c   :  { %1648 = vmatpush.bf16.msrb.mxu1 %v2361_v22  ;;  %1662 = vmatpush.bf16.msrb.mxu2 %v2439_v48 }
 0x38f   :  { %1516 = vmatpush.bf16.msrb.mxu0 %v2575_v41 }
 0x390   :  { %1649 = vmatpush.bf16.msrb.mxu1 %v2373_v26  ;;  %1663 = vmatpush.bf16.msrb.mxu2 %v2448_v51 }
 0x393   :  { %1517 = vmatpush.bf16.msrb.mxu0 %v2589_v46 }
 0x394   :  { %1650 = vmatpush.bf16.msrb.mxu1 %v2388_v31  ;;  %1664 = vmatpush.bf16.msrb.mxu2 %v2457_v54 }
 0x3f3   :  { %v1169_v6 = vpop.f32.mrf.mxu0  ;;  %v1183_v8 = vpop.f32.mrf.mxu1 }
 0x3f4   :  { %v1209_v12 = vadd.f32 %v1169_v6, %v2764_v40  ;;  %v1249_v15 = vadd.f32 %v1183_v8, %v2778_v55 }
 0x3f6   :  { %v1992_v19 = vmul.f32 -1.442695, %v1209_v12  ;;  %v1994_v22 = vmul.f32 -1.442695, %v1249_v15 }
 0x3f8   :  { %2182 = vpow2.f32 %v1992_v19 }
 0x3f9   :  { %2184 = vpow2.f32 %v1994_v22 }
 0x3fa   :  { %v1197_v56 = vpop.f32.mrf.mxu2 }
 0x3fb   :  { %v1171_v32 = vpop.f32.mrf.mxu0  ;;  %v1185_v26 = vpop.f32.mrf.mxu1 }
 0x3fc   :  { %v1210_v39 = vadd.f32 %v1171_v32, %v3156_v36  ;;  %v1250_v45 = vadd.f32 %v1185_v26, %v3157_v42 }
 0x3fe   :  { %v2183_v48 = vpop.eup %2182  ;;  %v1993_v31 = vmul.f32 -1.442695, %v1210_v39  ;;  %v1995_v58 = vmul.f32 -1.442695, %v1250_v45 }
 0x3ff   :  { %v2185_v51 = vpop.eup %2184  ;;  %v1217_v54 = vadd.f32 1.0, %v2183_v48 }
 0x400   :  { %v3002_v2 = vadd.f32 1.0, %v2185_v51  ;;  %2186 = vpow2.f32 %v1993_v31 }
 0x401   :  { %2188 = vrcp.f32 %v1217_v54  ;;  %v1230_v11 = vand.u32 2147483648, %v1217_v54  ;;  %v1228_v52 = vand.u32 2147483647, %v1217_v54  ;;  %vm1224_vm2 = vweird.f32 %v1217_v54 }
 0x402   :  { %2190 = vrcp.f32 %v3002_v2  ;;  %v1270_v33 = vand.u32 2147483648, %v3002_v2  ;;  %vm1264_vm8 = vweird.f32 %v3002_v2  ;;  %v1268_v21 = vand.u32 2147483647, %v3002_v2  ;;  %v1199_v19 = vpop.f32.mrf.mxu2 }
 0x403   :  { %2192 = vpow2.f32 %v1995_v58  ;;  %v1231_v17 = vor.u32 1.1754944e-38, %v1230_v11  ;;  %vm1229_vm4 = vcmp.eq.f32.partialorder %v1228_v52, 8.507059e+37  ;;  %v1316_v11 = vpop.permute.xlu2 %1315 }
 0x404   :  { %v1271_v26 = vor.u32 1.1754944e-38, %v1270_v33  ;;  %vm1269_vm13 = vcmp.eq.f32.partialorder %v1268_v21, 8.507059e+37 }
 0x406   :  { %v2187_v40 = vpop.eup %2186 }
 0x407   :  { %v2189_v55 = vpop.eup %2188  ;;  %v1218_v49 = vadd.f32 1.0, %v2187_v40 }
 0x408   :  { %v2191_v43 = vpop.eup %2190  ;;  %v1220_v37 = vmul.f32 %v2189_v55, %v1217_v54  ;;  %vm1225_vm1 = vweird.f32 %v2189_v55 }
 0x409   :  { %v2193_v57 = vpop.eup %2192  ;;  %v1260_v50 = vmul.f32 %v2191_v43, %v3002_v2  ;;  %2194 = vrcp.f32 %v1218_v49  ;;  %vm1226_vm3 = vmor %vm1224_vm2, %vm1225_vm1  ;;  %v1245_v30 = vand.u32 2147483648, %v1218_v49  ;;  %v1243_v47 = vand.u32 2147483647, %v1218_v49 }
 0x40a   :  { %v1221_v62 = vsub.f32 1.0, %v1220_v37  ;;  %v1258_v5 = vadd.f32 1.0, %v2193_v57  ;;  %vm1265_vm6 = vweird.f32 %v2191_v43  ;;  %vm1239_vm7 = vweird.f32 %v1218_v49 }
 0x40b   :  { %v1261_v16 = vsub.f32 1.0, %v1260_v50  ;;  %v1246_v8 = vor.u32 1.1754944e-38, %v1245_v30  ;;  %vm3010_vm10 = vmor %vm1264_vm8, %vm1265_vm6  ;;  %vm1244_vm11 = vcmp.eq.f32.partialorder %v1243_v47, 8.507059e+37 }
 0x40c   :  { %v1222_v38 = vmul.f32 %v2189_v55, %v1221_v62  ;;  %2196 = vrcp.f32 %v1258_v5  ;;  %v1285_v36 = vand.u32 2147483648, %v1258_v5  ;;  %vm1279_vm14 = vweird.f32 %v1258_v5 }
 0x40d   :  { %v1262_v63 = vmul.f32 %v2191_v43, %v1261_v16  ;;  %v1283_v42 = vand.u32 2147483647, %v1258_v5  ;;  %v3160_v16 = vld [vmem:[#allocation10_spill] sm:$0xff] }
 0x40e   :  { %v1223_v1 = vadd.f32 %v2189_v55, %v1222_v38  ;;  %v1286_v54 = vor.u32 1.1754944e-38, %v1285_v36 }
 0x40f   :  { %v2195_v29 = vpop.eup %2194  ;;  %v1263_v20 = vadd.f32 %v2191_v43, %v1262_v63  ;;  %vm1284_vm0 = vcmp.eq.f32.partialorder %v1283_v42, 8.507059e+37 }
 0x410   :  { %v1227_v18 = vsel %vm1226_vm3, %v2189_v55, %v1223_v1  ;;  %v1235_v4 = vmul.f32 %v2195_v29, %v1218_v49  ;;  %vm1240_vm5 = vweird.f32 %v2195_v29 }
 0x411   :  { %v1232_v24 = vsel %vm1229_vm4, %v1231_v17, %v1227_v18  ;;  %vm1241_vm9 = vmor %vm1239_vm7, %vm1240_vm5  ;;  %v1267_v15 = vsel %vm3010_vm10, %v2191_v43, %v1263_v20  ;;  %v3162_v18 = vld [vmem:[#allocation12_spill] sm:$0xff] }
 0x412   :  { %v2197_v59 = vpop.eup %2196  ;;  %v1289_v10 = vmul.f32 %v1232_v24, %v1197_v56  ;;  %v1236_v53 = vsub.f32 1.0, %v1235_v4  ;;  %v1272_v45 = vsel %vm1269_vm13, %v1271_v26, %v1267_v15  ;;  %v3161_v56 = vld [vmem:[#allocation5_spill] sm:$0xff] }
 0x413   :  { %v1275_v61 = vmul.f32 %v2197_v59, %v1258_v5  ;;  %vm1280_vm12 = vweird.f32 %v2197_v59  ;;  %v1295_v58 = vsub.f32 1.0, %v1272_v45  ;;  %v1299_v49 = vmul.f32 %v1272_v45, %v2965_v60  ;;  %v1311_v5 = vpop.permute.xlu1 %1310 }
 0x414   :  { %v1291_v35 = vadd.f32 %v1289_v10, %v2881_v25  ;;  %v1237_v14 = vmul.f32 %v2195_v29, %v1236_v53  ;;  %vm1281_vm15 = vmor %vm1279_vm14, %vm1280_vm12 }
 0x415   :  { %v1276_v27 = vsub.f32 1.0, %v1275_v61 }
 0x416   :  { %v1238_v9 = vadd.f32 %v2195_v29, %v1237_v14  ;;  %2198 = vtanh.f32 %v1291_v35 }
 0x417   :  { %v1277_v6 = vmul.f32 %v2197_v59, %v1276_v27 }
 0x418   :  { %v1242_v25 = vsel %vm1241_vm9, %v2195_v29, %v1238_v9 }
 0x419   :  { %v1247_v22 = vsel %vm1244_vm11, %v1246_v8, %v1242_v25  ;;  %v1278_v32 = vadd.f32 %v2197_v59, %v1277_v6 }
 0x41a   :  { %v1290_v39 = vmul.f32 %v1247_v22, %v1199_v19 }
 0x41b   :  { %v1282_v31 = vsel %vm1281_vm15, %v2197_v59, %v1278_v32 }
 0x41c   :  { %v1292_v48 = vadd.f32 %v1290_v39, %v2883_v28  ;;  %v2199_v51 = vpop.eup %2198  ;;  %v1287_v2 = vsel %vm1284_vm0, %v1286_v54, %v1282_v31 }
 0x41d   :  { %v1297_v40 = vmul.f32 %v2199_v51, %v1295_v58  ;;  %v1296_v55 = vsub.f32 1.0, %v1287_v2  ;;  %v1300_v57 = vmul.f32 %v1287_v2, %v2967_v44  ;;  %v3164_v2 = vld [vmem:[#allocation18_spill] sm:$0xff] }
 0x41e   :  { %2200 = vtanh.f32 %v1292_v48 }
 0x41f   :  { %v1301_v50 = vadd.f32 %v1299_v49, %v1297_v40 }
 0x421   :  { %v3019_v38 = vmul.f32 %v1311_v5, %v1301_v50 }
 0x424   :  { %v2201_v43 = vpop.eup %2200 }
 0x425   :  { %v1298_v37 = vmul.f32 %v2201_v43, %v1296_v55 }
 0x427   :  { %v1302_v62 = vadd.f32 %v1300_v57, %v1298_v37 }
 0x429   :  { %v2074_v28 = vpack.c.bf16 %v1302_v62, %v1301_v50  ;;  %v3021_v52 = vmul.f32 %v1316_v11, %v1302_v62 }
 0x42b   :  { %2094 = vst [vmem:[%s3126_s5 + $0x20] sm:$0xff] %v2074_v28   ;;  %v1320_v60 = vpack.c.bf16 %v3021_v52, %v3019_v38 }
 0x42d   :  { %1329 = vmatmul.bf16.vlgmr.msra.gmra.mxu3 %v1320_v60  ;;  %1343 = vmatmul.bf16.vlgmr.msra.gmra.mxu0 %v1320_v60 }
 0x42e   :  { %1357 = vmatmul.bf16.vlgmr.msra.gmra.mxu1 %v1320_v60  ;;  %1671 = vmatpush.bf16.msra.mxu3 %v2484_v0 }
 0x432   :  { %1672 = vmatpush.bf16.msra.mxu3 %v2494_v3 }
 0x436   :  { %1673 = vmatpush.bf16.msra.mxu3 %v2505_v7 }
 0x43a   :  { %1674 = vmatpush.bf16.msra.mxu3 %v2515_v13 }
 0x43e   :  { %1675 = vmatpush.bf16.msra.mxu3 %v2537_v23 }
 0x442   :  { %1676 = vmatpush.bf16.msra.mxu3 %v2556_v34 }
 0x446   :  { %1677 = vmatpush.bf16.msra.mxu3 %v2575_v41 }
 0x44a   :  { %1678 = vmatpush.bf16.msra.mxu3 %v2589_v46  ;;  %v3163_v46 = vld [vmem:[#allocation6_spill] sm:$0xff] }
 0x4aa   :  { %v1344_v44 = vpop.f32.mrf.mxu0 }
 0x4ab   :  { %v1410_v1 = vadd.f32 %v1344_v44, %v3160_v16  ;;  %v1358_v22 = vpop.f32.mrf.mxu1 }
 0x4ad   :  { %v2000_v29 = vmul.f32 -1.442695, %v1410_v1 }
 0x4af   :  { %2202 = vpow2.f32 %v2000_v29 }
 0x4b0   :  { %v1330_v0 = vpop.f32.mrf.mxu3 }
 0x4b1   :  { %v1370_v3 = vadd.f32 %v1330_v0, %v3161_v56 }
 0x4b2   :  { %v1346_v17 = vpop.f32.mrf.mxu0 }
 0x4b3   :  { %v1998_v7 = vmul.f32 -1.442695, %v1370_v3  ;;  %v1411_v13 = vadd.f32 %v1346_v17, %v3162_v18  ;;  %v1360_v28 = vpop.f32.mrf.mxu1  ;;  %v3167_v3 = vld [vmem:[#allocation19_spill] sm:$0xff] }
 0x4b5   :  { %v2203_v4 = vpop.eup %2202  ;;  %2204 = vpow2.f32 %v1998_v7  ;;  %v2001_v23 = vmul.f32 -1.442695, %v1411_v13 }
 0x4b6   :  { %v3039_v34 = vadd.f32 1.0, %v2203_v4 }
 0x4b7   :  { %2206 = vpow2.f32 %v2001_v23 }
 0x4b8   :  { %v1332_v41 = vpop.f32.mrf.mxu3  ;;  %2208 = vrcp.f32 %v3039_v34  ;;  %v1431_v43 = vand.u32 2147483648, %v3039_v34  ;;  %vm1425_vm8 = vweird.f32 %v3039_v34  ;;  %v1429_v57 = vand.u32 2147483647, %v3039_v34 }
 0x4b9   :  { %v1371_v63 = vadd.f32 %v1332_v41, %v3163_v46 }
 0x4ba   :  { %v1432_v16 = vor.u32 1.1754944e-38, %v1431_v43  ;;  %vm1430_vm13 = vcmp.eq.f32.partialorder %v1429_v57, 8.507059e+37 }
 0x4bb   :  { %v2205_v24 = vpop.eup %2204  ;;  %v1999_v59 = vmul.f32 -1.442695, %v1371_v63 }
 0x4bc   :  { %v1378_v10 = vadd.f32 1.0, %v2205_v24 }
 0x4bd   :  { %v2207_v53 = vpop.eup %2206  ;;  %2210 = vpow2.f32 %v1999_v59 }
 0x4be   :  { %2212 = vrcp.f32 %v1378_v10  ;;  %v3043_v61 = vadd.f32 1.0, %v2207_v53  ;;  %v2209_v30 = vpop.eup %2208  ;;  %v1391_v21 = vand.u32 2147483648, %v1378_v10  ;;  %v1389_v8 = vand.u32 2147483647, %v1378_v10 }
 0x4bf   :  { %v1421_v27 = vmul.f32 %v2209_v30, %v3039_v34  ;;  %vm1385_vm2 = vweird.f32 %v1378_v10  ;;  %vm1426_vm6 = vweird.f32 %v2209_v30 }
 0x4c0   :  { %2214 = vrcp.f32 %v3043_v61  ;;  %v1392_v32 = vor.u32 1.1754944e-38, %v1391_v21  ;;  %vm1390_vm4 = vcmp.eq.f32.partialorder %v1389_v8, 8.507059e+37  ;;  %vm3056_vm10 = vmor %vm1425_vm8, %vm1426_vm6  ;;  %v1446_v1 = vand.u32 2147483648, %v3043_v61 }
 0x4c1   :  { %v1422_v12 = vsub.f32 1.0, %v1421_v27  ;;  %vm1440_vm14 = vweird.f32 %v3043_v61  ;;  %v1444_v0 = vand.u32 2147483647, %v3043_v61  ;;  %v3168_v27 = vld [vmem:[#allocation7_spill] sm:$0xff] }
 0x4c2   :  { %v1447_v13 = vor.u32 1.1754944e-38, %v1446_v1 }
 0x4c3   :  { %v2211_v35 = vpop.eup %2210  ;;  %v1423_v39 = vmul.f32 %v2209_v30, %v1422_v12  ;;  %vm1445_vm0 = vcmp.eq.f32.partialorder %v1444_v0, 8.507059e+37 }
 0x4c4   :  { %v2213_v14 = vpop.eup %2212  ;;  %v1379_v47 = vadd.f32 1.0, %v2211_v35 }
 0x4c5   :  { %v1381_v20 = vmul.f32 %v2213_v14, %v1378_v10  ;;  %vm1386_vm1 = vweird.f32 %v2213_v14  ;;  %v1424_v55 = vadd.f32 %v2209_v30, %v1423_v39 }
 0x4c6   :  { %2216 = vrcp.f32 %v1379_v47  ;;  %v3047_v33 = vpop.eup %2214  ;;  %vm1387_vm3 = vmor %vm1385_vm2, %vm1386_vm1  ;;  %v1406_v51 = vand.u32 2147483648, %v1379_v47  ;;  %v1404_v58 = vand.u32 2147483647, %v1379_v47  ;;  %vm1400_vm7 = vweird.f32 %v1379_v47 }
 0x4c7   :  { %v1382_v9 = vsub.f32 1.0, %v1381_v20  ;;  %v1436_v25 = vmul.f32 %v3047_v33, %v3043_v61  ;;  %vm1441_vm12 = vweird.f32 %v3047_v33  ;;  %v1428_v44 = vsel %vm3056_vm10, %v2209_v30, %v1424_v55  ;;  %v1472_v61 = vpop.permute.xlu0 %1471  ;;  %v1477_v30 = vpop.permute.xlu1 %1476 }
 0x4c8   :  { %v1407_v50 = vor.u32 1.1754944e-38, %v1406_v51  ;;  %vm1405_vm11 = vcmp.eq.f32.partialorder %v1404_v58, 8.507059e+37  ;;  %vm1442_vm15 = vmor %vm1440_vm14, %vm1441_vm12  ;;  %v1433_v56 = vsel %vm1430_vm13, %v1432_v16, %v1428_v44 }
 0x4c9   :  { %v1383_v6 = vmul.f32 %v2213_v14, %v1382_v9  ;;  %v1437_v45 = vsub.f32 1.0, %v1436_v25  ;;  %v1456_v4 = vsub.f32 1.0, %v1433_v56  ;;  %v1460_v46 = vmul.f32 %v1433_v56, %v3019_v38  ;;  %v3169_v9 = vld [vmem:[#allocation14_spill] sm:$0xff] }
 0x4cb   :  { %v1384_v15 = vadd.f32 %v2213_v14, %v1383_v6  ;;  %v1438_v49 = vmul.f32 %v3047_v33, %v1437_v45 }
 0x4cc   :  { %v2217_v19 = vpop.eup %2216 }
 0x4cd   :  { %v1388_v26 = vsel %vm1387_vm3, %v2213_v14, %v1384_v15  ;;  %v1396_v36 = vmul.f32 %v2217_v19, %v1379_v47  ;;  %vm1401_vm5 = vweird.f32 %v2217_v19  ;;  %v1439_v11 = vadd.f32 %v3047_v33, %v1438_v49  ;;  %v3170_v15 = vld [vmem:[#allocation9_spill] sm:$0xff] }
 0x4ce   :  { %v1393_v42 = vsel %vm1390_vm4, %v1392_v32, %v1388_v26  ;;  %vm1402_vm9 = vmor %vm1400_vm7, %vm1401_vm5 }
 0x4cf   :  { %v1450_v48 = vmul.f32 %v1393_v42, %v1358_v22  ;;  %v1397_v31 = vsub.f32 1.0, %v1396_v36  ;;  %v1443_v7 = vsel %vm1442_vm15, %v3047_v33, %v1439_v11  ;;  %v3171_v22 = vld [vmem:[#allocation15_spill] sm:$0xff] }
 0x4d0   :  { %v1448_v23 = vsel %vm1445_vm0, %v1447_v13, %v1443_v7 }
 0x4d1   :  { %v1398_v54 = vmul.f32 %v2217_v19, %v1397_v31  ;;  %v1452_v40 = vadd.f32 %v1450_v48, %v3164_v2  ;;  %v1457_v41 = vsub.f32 1.0, %v1448_v23  ;;  %v1461_v59 = vmul.f32 %v1448_v23, %v3021_v52 }
 0x4d3   :  { %v1399_v37 = vadd.f32 %v2217_v19, %v1398_v54  ;;  %2218 = vtanh.f32 %v1452_v40 }
 0x4d5   :  { %v1403_v5 = vsel %vm1402_vm9, %v2217_v19, %v1399_v37 }
 0x4d6   :  { %v1408_v60 = vsel %vm1405_vm11, %v1407_v50, %v1403_v5 }
 0x4d7   :  { %v1451_v29 = vmul.f32 %v1408_v60, %v1360_v28 }
 0x4d9   :  { %v1453_v17 = vadd.f32 %v1451_v29, %v3167_v3  ;;  %v2219_v18 = vpop.eup %2218 }
 0x4da   :  { %v1458_v34 = vmul.f32 %v2219_v18, %v1456_v4  ;;  %v3172_v18 = vld [vmem:[#allocation20_spill] sm:$0xff] }
 0x4db   :  { %2220 = vtanh.f32 %v1453_v17 }
 0x4dc   :  { %v1462_v10 = vadd.f32 %v1460_v46, %v1458_v34 }
 0x4de   :  { %v3071_v14 = vmul.f32 %v1472_v61, %v1462_v10 }
 0x4e1   :  { %v2221_v63 = vpop.eup %2220 }
 0x4e2   :  { %v1459_v24 = vmul.f32 %v2221_v63, %v1457_v41 }
 0x4e4   :  { %v1463_v53 = vadd.f32 %v1461_v59, %v1459_v24 }
 0x4e6   :  { %v2079_v35 = vpack.c.bf16 %v1463_v53, %v1462_v10  ;;  %v3073_v47 = vmul.f32 %v1477_v30, %v1463_v53 }
 0x4e8   :  { %2095 = vst [vmem:[%s3126_s5 + $0x28] sm:$0xff] %v2079_v35   ;;  %v1481_v38 = vpack.c.bf16 %v3073_v47, %v3071_v14 }
 0x4ea   :  { %1490 = vmatmul.bf16.vlgmr.msra.gmra.mxu2 %v1481_v38  ;;  %1504 = vmatmul.bf16.vlgmr.msrb.gmra.mxu3 %v1481_v38 }
 0x4eb   :  { %1518 = vmatmul.bf16.vlgmr.msrb.gmra.mxu0 %v1481_v38 }
 0x568   :  { %v1519_v28 = vpop.f32.mrf.mxu0 }
 0x56d   :  { %v1491_v52 = vpop.f32.mrf.mxu2  ;;  %v1505_v20 = vpop.f32.mrf.mxu3 }
 0x56e   :  { %v1531_v33 = vadd.f32 %v1491_v52, %v3168_v27  ;;  %v1571_v21 = vadd.f32 %v1505_v20, %v3169_v9 }
 0x570   :  { %v2004_v6 = vmul.f32 -1.442695, %v1531_v33  ;;  %v2006_v8 = vmul.f32 -1.442695, %v1571_v21  ;;  %v1521_v30 = vpop.f32.mrf.mxu0  ;;  %v3173_v21 = vld [vmem:[#allocation21_spill] sm:$0xff] }
 0x572   :  { %2222 = vpow2.f32 %v2004_v6 }
 0x573   :  { %2224 = vpow2.f32 %v2006_v8 }
 0x575   :  { %v1493_v12 = vpop.f32.mrf.mxu2  ;;  %v1507_v25 = vpop.f32.mrf.mxu3 }
 0x576   :  { %v1532_v19 = vadd.f32 %v1493_v12, %v3170_v15  ;;  %v1572_v32 = vadd.f32 %v1507_v25, %v3171_v22 }
 0x578   :  { %v2223_v26 = vpop.eup %2222  ;;  %v2005_v36 = vmul.f32 -1.442695, %v1532_v19  ;;  %v2007_v45 = vmul.f32 -1.442695, %v1572_v32 }
 0x579   :  { %v2225_v39 = vpop.eup %2224  ;;  %v1539_v42 = vadd.f32 1.0, %v2223_v26 }
 0x57a   :  { %v3084_v48 = vadd.f32 1.0, %v2225_v39  ;;  %2226 = vpow2.f32 %v2005_v36 }
 0x57b   :  { %2228 = vrcp.f32 %v1539_v42  ;;  %v1552_v37 = vand.u32 2147483648, %v1539_v42  ;;  %v1550_v50 = vand.u32 2147483647, %v1539_v42  ;;  %vm1546_vm2 = vweird.f32 %v1539_v42 }
 0x57c   :  { %2230 = vrcp.f32 %v3084_v48  ;;  %v1592_v46 = vand.u32 2147483648, %v3084_v48  ;;  %vm1586_vm8 = vweird.f32 %v3084_v48  ;;  %v1590_v24 = vand.u32 2147483647, %v3084_v48 }
 0x57d   :  { %2232 = vpow2.f32 %v2007_v45  ;;  %v1553_v60 = vor.u32 1.1754944e-38, %v1552_v37  ;;  %vm1551_vm4 = vcmp.eq.f32.partialorder %v1550_v50, 8.507059e+37  ;;  %v3175_v37 = vld [vmem:[#allocation16_spill] sm:$0xff] }
 0x57e   :  { %v1593_v52 = vor.u32 1.1754944e-38, %v1592_v46  ;;  %vm1591_vm13 = vcmp.eq.f32.partialorder %v1590_v24, 8.507059e+37 }
 0x580   :  { %v2227_v31 = vpop.eup %2226 }
 0x581   :  { %v2229_v51 = vpop.eup %2228  ;;  %v1540_v54 = vadd.f32 1.0, %v2227_v31  ;;  %v1638_v31 = vpop.permute.xlu0 %1637 }
 0x582   :  { %v2231_v58 = vpop.eup %2230  ;;  %v1542_v2 = vmul.f32 %v2229_v51, %v1539_v42  ;;  %vm1547_vm1 = vweird.f32 %v2229_v51 }
 0x583   :  { %v2233_v40 = vpop.eup %2232  ;;  %v1582_v55 = vmul.f32 %v2231_v58, %v3084_v48  ;;  %2234 = vrcp.f32 %v1540_v54  ;;  %vm1548_vm3 = vmor %vm1546_vm2, %vm1547_vm1  ;;  %v1567_v17 = vand.u32 2147483648, %v1540_v54  ;;  %v1565_v23 = vand.u32 2147483647, %v1540_v54 }
 0x584   :  { %v1543_v49 = vsub.f32 1.0, %v1542_v2  ;;  %v1580_v43 = vadd.f32 1.0, %v2233_v40  ;;  %vm1587_vm6 = vweird.f32 %v2231_v58  ;;  %vm1561_vm7 = vweird.f32 %v1540_v54  ;;  %v3174_v40 = vld [vmem:[#allocation11_spill] sm:$0xff] }
 0x585   :  { %v1583_v62 = vsub.f32 1.0, %v1582_v55  ;;  %v1568_v59 = vor.u32 1.1754944e-38, %v1567_v17  ;;  %vm1588_vm10 = vmor %vm1586_vm8, %vm1587_vm6  ;;  %vm1566_vm11 = vcmp.eq.f32.partialorder %v1565_v23, 8.507059e+37 }
 0x586   :  { %v1544_v57 = vmul.f32 %v2229_v51, %v1543_v49  ;;  %2236 = vrcp.f32 %v1580_v43  ;;  %v1607_v27 = vand.u32 2147483648, %v1580_v43  ;;  %vm1601_vm14 = vweird.f32 %v1580_v43 }
 0x587   :  { %v1584_v29 = vmul.f32 %v2231_v58, %v1583_v62  ;;  %v1605_v33 = vand.u32 2147483647, %v1580_v43 }
 0x588   :  { %v1545_v5 = vadd.f32 %v2229_v51, %v1544_v57  ;;  %v1608_v25 = vor.u32 1.1754944e-38, %v1607_v27 }
 0x589   :  { %v2235_v11 = vpop.eup %2234  ;;  %v1585_v34 = vadd.f32 %v2231_v58, %v1584_v29  ;;  %vm1606_vm0 = vcmp.eq.f32.partialorder %v1605_v33, 8.507059e+37 }
 0x58a   :  { %v1549_v44 = vsel %vm1548_vm3, %v2229_v51, %v1545_v5  ;;  %v1557_v16 = vmul.f32 %v2235_v11, %v1540_v54  ;;  %vm1562_vm5 = vweird.f32 %v2235_v11  ;;  %v1633_v51 = vpop.permute.xlu2 %1632  ;;  %v3176_v5 = vld [vmem:[#allocation13_spill] sm:$0xff] }
 0x58b   :  { %v1554_v1 = vsel %vm1551_vm4, %v1553_v60, %v1549_v44  ;;  %vm1563_vm9 = vmor %vm1561_vm7, %vm1562_vm5  ;;  %v1589_v61 = vsel %vm1588_vm10, %v2231_v58, %v1585_v34 }
 0x58c   :  { %v2237_v0 = vpop.eup %2236  ;;  %v1611_v56 = vmul.f32 %v1554_v1, %v1519_v28  ;;  %v1558_v3 = vsub.f32 1.0, %v1557_v16  ;;  %v1594_v9 = vsel %vm1591_vm13, %v1593_v52, %v1589_v61  ;;  %v3177_v1 = vld [vmem:[#allocation17_spill] sm:$0xff] }
 0x58d   :  { %v1597_v7 = vmul.f32 %v2237_v0, %v1580_v43  ;;  %vm1602_vm12 = vweird.f32 %v2237_v0  ;;  %v1617_v15 = vsub.f32 1.0, %v1594_v9  ;;  %v1621_v26 = vmul.f32 %v1594_v9, %v3071_v14 }
 0x58e   :  { %v1613_v13 = vadd.f32 %v1611_v56, %v3172_v18  ;;  %v1559_v4 = vmul.f32 %v2235_v11, %v1558_v3  ;;  %vm1603_vm15 = vmor %vm1601_vm14, %vm1602_vm12 }
 0x58f   :  { %v1598_v41 = vsub.f32 1.0, %v1597_v7 }
 0x590   :  { %v1560_v63 = vadd.f32 %v2235_v11, %v1559_v4  ;;  %2238 = vtanh.f32 %v1613_v13 }
 0x591   :  { %v1599_v10 = vmul.f32 %v2237_v0, %v1598_v41 }
 0x592   :  { %v1564_v53 = vsel %vm1563_vm9, %v2235_v11, %v1560_v63 }
 0x593   :  { %v1569_v35 = vsel %vm1566_vm11, %v1568_v59, %v1564_v53  ;;  %v1600_v38 = vadd.f32 %v2237_v0, %v1599_v10 }
 0x594   :  { %v1612_v20 = vmul.f32 %v1569_v35, %v1521_v30 }
 0x595   :  { %v1604_v8 = vsel %vm1603_vm15, %v2237_v0, %v1600_v38 }
 0x596   :  { %v1614_v6 = vadd.f32 %v1612_v20, %v3173_v21  ;;  %v2239_v12 = vpop.eup %2238  ;;  %v1609_v19 = vsel %vm1606_vm0, %v1608_v25, %v1604_v8 }
 0x597   :  { %v1619_v22 = vmul.f32 %v2239_v12, %v1617_v15  ;;  %v1618_v32 = vsub.f32 1.0, %v1609_v19  ;;  %v1622_v42 = vmul.f32 %v1609_v19, %v3073_v47  ;;  %v3178_v12 = vld [vmem:[#allocation22_spill] sm:$0xff] }
 0x598   :  { %2240 = vtanh.f32 %v1614_v6 }
 0x599   :  { %v1623_v45 = vadd.f32 %v1621_v26, %v1619_v22 }
 0x59b   :  { %v3095_v58 = vmul.f32 %v1633_v51, %v1623_v45 }
 0x59e   :  { %v2241_v36 = vpop.eup %2240 }
 0x59f   :  { %v1620_v39 = vmul.f32 %v2241_v36, %v1618_v32 }
 0x5a1   :  { %v1624_v48 = vadd.f32 %v1622_v42, %v1620_v39 }
 0x5a3   :  { %v2084_v54 = vpack.c.bf16 %v1624_v48, %v1623_v45  ;;  %v3097_v2 = vmul.f32 %v1638_v31, %v1624_v48 }
 0x5a5   :  { %2096 = vst [vmem:[%s3126_s5 + $0x30] sm:$0xff] %v2084_v54   ;;  %v1642_v14 = vpack.c.bf16 %v3097_v2, %v3095_v58 }
 0x5a7   :  { %1651 = vmatmul.bf16.vlgmr.msrb.gmra.mxu1 %v1642_v14  ;;  %1665 = vmatmul.bf16.vlgmr.msrb.gmra.mxu2 %v1642_v14 }
 0x5a8   :  { %1679 = vmatmul.bf16.vlgmr.msra.gmra.mxu3 %v1642_v14 }
 0x624   :  { %v1652_v47 = vpop.f32.mrf.mxu1 }
 0x625   :  { %v1692_v55 = vadd.f32 %v1652_v47, %v3174_v40 }
 0x627   :  { %v2010_v49 = vmul.f32 -1.442695, %v1692_v55 }
 0x629   :  { %2242 = vpow2.f32 %v2010_v49 }
 0x62a   :  { %v1666_v43 = vpop.f32.mrf.mxu2 }
 0x62b   :  { %v1732_v57 = vadd.f32 %v1666_v43, %v3175_v37  ;;  %v1680_v35 = vpop.f32.mrf.mxu3 }
 0x62c   :  { %v1654_v50 = vpop.f32.mrf.mxu1 }
 0x62d   :  { %v2012_v62 = vmul.f32 -1.442695, %v1732_v57  ;;  %v1693_v11 = vadd.f32 %v1654_v50, %v3176_v5  ;;  %v3179_v5 = vld [vmem:[#allocation23_spill] sm:$0xff] }
 0x62f   :  { %v2243_v28 = vpop.eup %2242  ;;  %2244 = vpow2.f32 %v2012_v62  ;;  %v2011_v60 = vmul.f32 -1.442695, %v1693_v11 }
 0x630   :  { %v1700_v44 = vadd.f32 1.0, %v2243_v28 }
 0x631   :  { %2246 = vpow2.f32 %v2011_v60 }
 0x632   :  { %2248 = vrcp.f32 %v1700_v44  ;;  %v1668_v16 = vpop.f32.mrf.mxu2  ;;  %v1713_v23 = vand.u32 2147483648, %v1700_v44  ;;  %v1711_v46 = vand.u32 2147483647, %v1700_v44  ;;  %vm1707_vm2 = vweird.f32 %v1700_v44 }
 0x633   :  { %v1733_v29 = vadd.f32 %v1668_v16, %v3177_v1  ;;  %v1682_v14 = vpop.f32.mrf.mxu3 }
 0x634   :  { %v1714_v53 = vor.u32 1.1754944e-38, %v1713_v23  ;;  %vm1712_vm4 = vcmp.eq.f32.partialorder %v1711_v46, 8.507059e+37 }
 0x635   :  { %v2245_v0 = vpop.eup %2244  ;;  %v2013_v56 = vmul.f32 -1.442695, %v1733_v29 }
 0x636   :  { %v1740_v3 = vadd.f32 1.0, %v2245_v0 }
 0x637   :  { %v2247_v17 = vpop.eup %2246  ;;  %2250 = vpow2.f32 %v2013_v56 }
 0x638   :  { %v2249_v7 = vpop.eup %2248  ;;  %2252 = vrcp.f32 %v1740_v3  ;;  %v1701_v13 = vadd.f32 1.0, %v2247_v17  ;;  %v1753_v33 = vand.u32 2147483648, %v1740_v3  ;;  %v1751_v21 = vand.u32 2147483647, %v1740_v3 }
 0x639   :  { %v1703_v18 = vmul.f32 %v2249_v7, %v1700_v44  ;;  %vm1708_vm1 = vweird.f32 %v2249_v7  ;;  %vm1747_vm6 = vweird.f32 %v1740_v3 }
 0x63a   :  { %2254 = vrcp.f32 %v1701_v13  ;;  %vm1709_vm3 = vmor %vm1707_vm2, %vm1708_vm1  ;;  %v1728_v15 = vand.u32 2147483648, %v1701_v13  ;;  %v1726_v32 = vand.u32 2147483647, %v1701_v13  ;;  %v1754_v26 = vor.u32 1.1754944e-38, %v1753_v33 }
 0x63b   :  { %v1704_v4 = vsub.f32 1.0, %v1703_v18  ;;  %vm1752_vm9 = vcmp.eq.f32.partialorder %v1751_v21, 8.507059e+37  ;;  %vm1722_vm10 = vweird.f32 %v1701_v13 }
 0x63c   :  { %v1729_v31 = vor.u32 1.1754944e-38, %v1728_v15  ;;  %vm1727_vm12 = vcmp.eq.f32.partialorder %v1726_v32, 8.507059e+37 }
 0x63d   :  { %v2251_v34 = vpop.eup %2250  ;;  %v1705_v41 = vmul.f32 %v2249_v7, %v1704_v4 }
 0x63e   :  { %v2253_v63 = vpop.eup %2252  ;;  %v1741_v24 = vadd.f32 1.0, %v2251_v34 }
 0x63f   :  { %v1743_v59 = vmul.f32 %v2253_v63, %v1740_v3  ;;  %v1706_v10 = vadd.f32 %v2249_v7, %v1705_v41  ;;  %vm1748_vm5 = vweird.f32 %v2253_v63 }
 0x640   :  { %2256 = vrcp.f32 %v1741_v24  ;;  %v2255_v61 = vpop.eup %2254  ;;  %vm1749_vm7 = vmor %vm1747_vm6, %vm1748_vm5  ;;  %v1768_v55 = vand.u32 2147483648, %v1741_v24  ;;  %vm1762_vm14 = vweird.f32 %v1741_v24  ;;  %v1766_v57 = vand.u32 2147483647, %v1741_v24 }
 0x641   :  { %v1744_v30 = vsub.f32 1.0, %v1743_v59  ;;  %v1710_v38 = vsel %vm1709_vm3, %v2249_v7, %v1706_v10  ;;  %v1718_v20 = vmul.f32 %v2255_v61, %v1701_v13  ;;  %vm1723_vm8 = vweird.f32 %v2255_v61 }
 0x642   :  { %v1715_v52 = vsel %vm1712_vm4, %v1714_v53, %v1710_v38  ;;  %vm1724_vm11 = vmor %vm1722_vm10, %vm1723_vm8  ;;  %v1769_v44 = vor.u32 1.1754944e-38, %v1768_v55  ;;  %vm1767_vm0 = vcmp.eq.f32.partialorder %v1766_v57, 8.507059e+37 }
 0x643   :  { %v1745_v27 = vmul.f32 %v2253_v63, %v1744_v30  ;;  %v1772_v9 = vmul.f32 %v1715_v52, %v1680_v35  ;;  %v1719_v6 = vsub.f32 1.0, %v1718_v20 }
 0x645   :  { %v1746_v8 = vadd.f32 %v2253_v63, %v1745_v27  ;;  %v1774_v25 = vadd.f32 %v1772_v9, %v3178_v12  ;;  %v1720_v22 = vmul.f32 %v2255_v61, %v1719_v6 }
 0x646   :  { %v2257_v19 = vpop.eup %2256 }
 0x647   :  { %v1750_v36 = vsel %vm1749_vm7, %v2253_v63, %v1746_v8  ;;  %2258 = vtanh.f32 %v1774_v25  ;;  %v1758_v39 = vmul.f32 %v2257_v19, %v1741_v24  ;;  %v1721_v42 = vadd.f32 %v2255_v61, %v1720_v22 }
 0x648   :  { %v1755_v45 = vsel %vm1752_vm9, %v1754_v26, %v1750_v36  ;;  %vm1763_vm13 = vweird.f32 %v2257_v19 }
 0x649   :  { %v1759_v48 = vsub.f32 1.0, %v1758_v39  ;;  %v1725_v51 = vsel %vm1724_vm11, %v2255_v61, %v1721_v42  ;;  %v1778_v40 = vsub.f32 1.0, %v1755_v45  ;;  %v1782_v62 = vmul.f32 %v1755_v45, %v3095_v58  ;;  %vm1764_vm15 = vmor %vm1762_vm14, %vm1763_vm13 }
 0x64a   :  { %v1730_v47 = vsel %vm1727_vm12, %v1729_v31, %v1725_v51 }
 0x64b   :  { %v1760_v54 = vmul.f32 %v2257_v19, %v1759_v48  ;;  %v1773_v49 = vmul.f32 %v1730_v47, %v1682_v14 }
 0x64d   :  { %v2259_v43 = vpop.eup %2258  ;;  %v1761_v37 = vadd.f32 %v2257_v19, %v1760_v54  ;;  %v1775_v11 = vadd.f32 %v1773_v49, %v3179_v5 }
 0x64e   :  { %v1780_v50 = vmul.f32 %v2259_v43, %v1778_v40 }
 0x64f   :  { %v1765_v28 = vsel %vm1764_vm15, %v2257_v19, %v1761_v37  ;;  %2260 = vtanh.f32 %v1775_v11 }
 0x650   :  { %v1784_v60 = vadd.f32 %v1782_v62, %v1780_v50  ;;  %v1770_v16 = vsel %vm1767_vm0, %v1769_v44, %v1765_v28 }
 0x651   :  { %v1779_v1 = vsub.f32 1.0, %v1770_v16  ;;  %v1783_v56 = vmul.f32 %v1770_v16, %v3097_v2 }
 0x652   :  { %1796 = vst [vmem:[%s3127_s6] sm:$0xff] %v1784_v60 }
 0x655   :  { %v2261_v29 = vpop.eup %2260 }
 0x656   :  { %v1781_v0 = vmul.f32 %v2261_v29, %v1779_v1 }
 0x658   :  { %v1785_v3 = vadd.f32 %v1783_v56, %v1781_v0 }
 0x65a   :  { %v2089_v58 = vpack.c.bf16 %v1785_v3, %v1784_v60  ;;  %1797 = vst [vmem:[%s3127_s6 + $0x8] sm:$0xff] %v1785_v3 }
 0x65c   :  { %2097 = vst [vmem:[%s3126_s5 + $0x38] sm:$0xff] %v2089_v58  }

</bundles_post_ra>
